<compile_context>
chip_gen: v5e
topology: v5e:2x2
jax: 0.10.0
libtpu: 0.0.40
codegen_flags: <defaults>
</compile_context>

<pallas_src>
import functools

import jax
import jax.numpy as jnp
import numpy as np
from jax import lax
from jax.experimental import pallas as pl
from jax.experimental.pallas import tpu as pltpu

BN_EPS = 1e-5
LANE = 128


def _round_up(v, m):
    return (v + m - 1) // m * m


def _inverted_residual_kernel(
    x_ref,    # (1, H+2, W+2, Cin_p)  spatially zero-padded NHWC input (f32)
    w1_ref,   # (Cin_p, Chid_p)       expand weights, BN1 scale folded (bf16)
    b1_ref,   # (1, Chid_p)           BN1 shift (f32)
    dw_ref,   # (3, 3, Chid_p)        depthwise taps, BN2 scale folded (f32)
    b2_ref,   # (1, Chid_p)           BN2 shift (f32)
    w3_ref,   # (Chid_p, Cout_p)      project weights, BN3 scale folded (bf16)
    b3_ref,   # (1, Cout_p)           BN3 shift (f32)
    o_ref,    # (1, TH, Wo, Cout_p)   output row block
    *,
    stride: int,
    th: int,
    H: int,
    W: int,
    use_res_connect: bool,
):
    r = pl.program_id(1)
    Cin_p = x_ref.shape[3]
    Chid_p = w1_ref.shape[1]
    Cout_p = w3_ref.shape[1]
    Wp = W + 2
    Wo = (W - 1) // stride + 1
    th_in = (th - 1) * stride + 3          # padded input rows feeding th output rows

    row0 = r * (th * stride)               # first padded-input row for this block
    xw = x_ref[0, pl.ds(row0, th_in), :, :]            # (th_in, Wp, Cin_p), f32

    # ---- 1x1 expand conv: bf16 MXU matmul, f32 accumulation; BN1 scale folded ----
    h = jnp.dot(
        xw.reshape(th_in * Wp, Cin_p).astype(jnp.bfloat16),
        w1_ref[...],
        preferred_element_type=jnp.float32,
    )
    h = jnp.clip(h + b1_ref[0], 0.0, 6.0)
    h = h.reshape(th_in, Wp, Chid_p)

    # ---- zero the depthwise zero-padding ring ----
    # The wrapper zero-pads x spatially, but BN shift + ReLU6 makes those border
    # pixels nonzero, so mask them here (cheaper than materializing jnp.pad(h)).
    prow = row0 + lax.broadcasted_iota(jnp.int32, (th_in, Wp, 1), 0)
    pcol = lax.broadcasted_iota(jnp.int32, (th_in, Wp, 1), 1)
    valid = (prow >= 1) & (prow <= H) & (pcol >= 1) & (pcol <= W)
    h = jnp.where(valid, h, 0.0)

    # ---- 3x3 depthwise conv (stride), BN2 scale folded into the taps ----
    # Precompute the 3 column-shifted planes once and reuse across the row taps.
    if stride == 1:
        cols = [h[:, dx:dx + Wo, :] for dx in range(3)]          # (th_in, Wo, Chid_p)
    else:
        # stride 2: even/odd de-interleave via reshape + static parity index
        # (avoids sublane-strided slices, which lower to expensive XLU copies).
        ca = h[:, 0:2 * Wo, :].reshape(th_in, Wo, 2, Chid_p)
        cb = h[:, 1:2 * Wo + 1, :].reshape(th_in, Wo, 2, Chid_p)
        cols = [ca[:, :, 0, :], ca[:, :, 1, :], cb[:, :, 1, :]]  # dx = 0, 1, 2

    dw = dw_ref[...]
    acc = None
    for dy in range(3):
        for dx in range(3):
            c = cols[dx]
            if stride == 1:
                win = c[dy:dy + th, :, :]
            else:
                # rows: split the (major) row dim into (th, 2) and pick the parity.
                if dy < 2:
                    win = c[0:2 * th, :, :].reshape(th, 2, Wo, Chid_p)[:, dy, :, :]
                else:
                    win = c[1:2 * th + 1, :, :].reshape(th, 2, Wo, Chid_p)[:, 1, :, :]
            t = win * dw[dy, dx]
            acc = t if acc is None else acc + t                  # (th, Wo, Chid_p) f32
    acc = jnp.clip(acc + b2_ref[0], 0.0, 6.0)

    # ---- 1x1 project conv: bf16 MXU matmul, f32 accumulation; BN3 scale folded ----
    out = jnp.dot(
        acc.reshape(th * Wo, Chid_p).astype(jnp.bfloat16),
        w3_ref[...],
        preferred_element_type=jnp.float32,
    )
    out = (out + b3_ref[0]).reshape(th, Wo, Cout_p)

    if use_res_connect:
        # stride == 1 and Cin == Cout; channels are padded identically in the
        # wrapper, so this is a plain full-tile f32 add.
        out = out + xw[1:th + 1, 1:W + 1, :]

    o_ref[0] = out.astype(o_ref.dtype)


def _fold_bn(gamma, beta, mean, var):
    scale = gamma / jnp.sqrt(var + BN_EPS)
    shift = beta - mean * scale
    return scale, shift


def _pick_row_block(ho):
    # largest divisor of Ho that is <= 16 (keeps the expanded row-block tile small)
    for cand in range(min(ho, 16), 0, -1):
        if ho % cand == 0:
            return cand
    return 1


def inverted_residual_forward_nhwc(x, params, *, stride, use_res_connect,
                                   row_block=None):
    """Core NHWC entry point. x: (N, H, W, Cin) f32 -> (N, Ho, Wo, Cout)."""
    assert stride in (1, 2)
    N, H, W, Cin = x.shape

    # PyTorch-layout weights -> matmul / NHWC-depthwise layout.
    w1 = params["w1"][:, :, 0, 0].T                                # (Cin, Chid)
    dw = jnp.transpose(params["dw"][:, 0, :, :], (1, 2, 0))        # (3, 3, Chid)
    w3 = params["w3"][:, :, 0, 0].T                                # (Chid, Cout)
    Chid = w1.shape[1]
    Cout = w3.shape[1]

    s1, b1 = _fold_bn(params["g1"], params["be1"], params["m1"], params["v1"])
    s2, b2 = _fold_bn(params["g2"], params["be2"], params["m2"], params["v2"])
    s3, b3 = _fold_bn(params["g3"], params["be3"], params["m3"], params["v3"])

    # Fold BN scales into the conv weights; the kernel only adds the shifts.
    w1 = w1 * s1[None, :]
    dw = dw * s2[None, None, :]
    w3 = w3 * s3[None, :]

    # Pad channel dims to lane multiples for lane-dense MXU tiles / stores.
    Chid_p = _round_up(Chid, LANE)
    Cout_p = _round_up(Cout, LANE)
    if use_res_connect:
        assert stride == 1 and Cin == Cout, "residual needs stride=1 and Cin==Cout"
        Cin_p = Cout_p                      # residual add becomes a full-tile add
    else:
        Cin_p = _round_up(Cin, 8)

    w1p = jnp.pad(w1, ((0, Cin_p - Cin), (0, Chid_p - Chid))).astype(jnp.bfloat16)
    dwp = jnp.pad(dw, ((0, 0), (0, 0), (0, Chid_p - Chid))).astype(jnp.float32)
    w3p = jnp.pad(w3, ((0, Chid_p - Chid), (0, Cout_p - Cout))).astype(jnp.bfloat16)
    b1p = jnp.pad(b1, (0, Chid_p - Chid)).reshape(1, Chid_p).astype(jnp.float32)
    b2p = jnp.pad(b2, (0, Chid_p - Chid)).reshape(1, Chid_p).astype(jnp.float32)
    b3p = jnp.pad(b3, (0, Cout_p - Cout)).reshape(1, Cout_p).astype(jnp.float32)

    # Spatially zero-pad the input once (kernel masks the ring after the expand).
    xp = jnp.pad(x, ((0, 0), (1, 1), (1, 1), (0, Cin_p - Cin))).astype(jnp.float32)

    Ho = (H - 1) // stride + 1
    Wo = (W - 1) // stride + 1
    th = _pick_row_block(Ho) if row_block is None else row_block
    assert Ho % th == 0, "row_block must divide the output height"

    kernel = functools.partial(
        _inverted_residual_kernel,
        stride=stride, th=th, H=H, W=W, use_res_connect=use_res_connect)

    def full(shape):
        return pl.BlockSpec(shape, lambda n, r: (0,) * len(shape))

    flops = int(N * (2 * H * W * Cin * Chid
                     + 18 * Ho * Wo * Chid
                     + 2 * Ho * Wo * Chid * Cout))
    bytes_accessed = int(4 * (N * H * W * Cin + N * Ho * Wo * Cout
                              + Cin * Chid + 9 * Chid + Chid * Cout))

    out = pl.pallas_call(
        kernel,
        out_shape=jax.ShapeDtypeStruct((N, Ho, Wo, Cout_p), jnp.float32),
        grid=(N, Ho // th),
        in_specs=[
            # Full padded image per batch element; the block index is constant
            # over the row axis, so it is DMA'd once per n and then revisited.
            pl.BlockSpec((1, H + 2, W + 2, Cin_p), lambda n, r: (n, 0, 0, 0)),
            full(w1p.shape), full(b1p.shape), full(dwp.shape), full(b2p.shape),
            full(w3p.shape), full(b3p.shape),
        ],
        out_specs=pl.BlockSpec((1, th, Wo, Cout_p), lambda n, r: (n, r, 0, 0)),
        compiler_params=pltpu.CompilerParams(
            dimension_semantics=("parallel", "parallel"),
            vmem_limit_bytes=48 * 1024 * 1024,
        ),
        cost_estimate=pl.CostEstimate(
            flops=flops, transcendentals=0, bytes_accessed=bytes_accessed),
    )(xp, w1p, b1p, dwp, b2p, w3p, b3p)

    return out[..., :Cout]                 # drop channel padding


def inverted_residual_forward(x_nchw, params, *, stride, use_res_connect,
                              row_block=None):
    """PyTorch-compatible NCHW wrapper: (N, Cin, H, W) f32 -> (N, Cout, Ho, Wo).

    Note: the NCHW<->NHWC transposes are done here once; callers that already
    hold NHWC activations should use `inverted_residual_forward_nhwc` directly
    to avoid the extra HBM round-trips.
    """
    x = jnp.transpose(x_nchw, (0, 2, 3, 1))
    out = inverted_residual_forward_nhwc(
        x, params, stride=stride, use_res_connect=use_res_connect,
        row_block=row_block)
    return jnp.transpose(out, (0, 3, 1, 2))


def _reference_forward(x_nchw, params, *, stride, use_res_connect):
    """Pure-JAX f32 reference (NHWC convs) for correctness checking."""
    x = jnp.transpose(x_nchw, (0, 2, 3, 1))
    dn = ("NHWC", "HWIO", "NHWC")
    Chid = params["w1"].shape[0]

    w1 = jnp.transpose(params["w1"], (2, 3, 1, 0))        # (1,1,Cin,Chid)
    h = lax.conv_general_dilated(x, w1, (1, 1), "VALID", dimension_numbers=dn)
    s1, b1 = _fold_bn(params["g1"], params["be1"], params["m1"], params["v1"])
    h = jnp.clip(h * s1 + b1, 0.0, 6.0)

    dw = jnp.transpose(params["dw"], (2, 3, 1, 0))        # (3,3,1,Chid)
    h = lax.conv_general_dilated(
        h, dw, (stride, stride), ((1, 1), (1, 1)),
        dimension_numbers=dn, feature_group_count=Chid)
    s2, b2 = _fold_bn(params["g2"], params["be2"], params["m2"], params["v2"])
    h = jnp.clip(h * s2 + b2, 0.0, 6.0)

    w3 = jnp.transpose(params["w3"], (2, 3, 1, 0))        # (1,1,Chid,Cout)
    h = lax.conv_general_dilated(h, w3, (1, 1), "VALID", dimension_numbers=dn)
    s3, b3 = _fold_bn(params["g3"], params["be3"], params["m3"], params["v3"])
    h = h * s3 + b3

    if use_res_connect:
        h = h + x
    return jnp.transpose(h, (0, 3, 1, 2))


def make_params(key, inp, oup, expand_ratio=6):
    hid = inp * expand_ratio
    ks = jax.random.split(key, 12)
    return {
        # conv weights in PyTorch layout
        "w1": jax.random.normal(ks[0], (hid, inp, 1, 1), jnp.float32) * 0.2,
        "dw": jax.random.normal(ks[1], (hid, 1, 3, 3), jnp.float32) * 0.2,
        "w3": jax.random.normal(ks[2], (oup, hid, 1, 1), jnp.float32) * 0.2,
        # BN params (eval-mode running stats)
        "g1": jax.random.uniform(ks[3], (hid,), minval=0.5, maxval=1.5),
        "be1": jax.random.normal(ks[4], (hid,)) * 0.1,
        "m1": jax.random.normal(ks[5], (hid,)) * 0.1,
        "v1": jax.random.uniform(ks[6], (hid,), minval=0.5, maxval=1.5),
        "g2": jax.random.uniform(ks[7], (hid,), minval=0.5, maxval=1.5),
        "be2": jax.random.normal(ks[8], (hid,)) * 0.1,
        "m2": jax.random.normal(ks[9], (hid,)) * 0.1,
        "v2": jax.random.uniform(ks[10], (hid,), minval=0.5, maxval=1.5),
        "g3": jnp.ones((oup,), jnp.float32),
        "be3": jnp.zeros((oup,), jnp.float32),
        "m3": jnp.zeros((oup,), jnp.float32),
        "v3": jnp.ones((oup,), jnp.float32),
    }


if __name__ == "__main__":
    key = jax.random.PRNGKey(0)
    N, H, W = 2, 16, 16
    # bf16 MXU matmuls in the kernel vs. the pure-f32 reference -> loose tolerances.
    RTOL, ATOL = 5e-2, 2.5e-1

    # Case 1: stride=1 with residual connection (inp == oup); row_block=8
    # exercises multi row-block tiling (interior + boundary masking).
    inp, oup, stride, use_res = 4, 4, 1, True
    kx, kp, key = jax.random.split(key, 3)
    x = jax.random.normal(kx, (N, inp, H, W), jnp.float32)    # NCHW, like PyTorch
    params = make_params(kp, inp, oup, expand_ratio=6)
    out = inverted_residual_forward(
        x, params, stride=stride, use_res_connect=use_res, row_block=8)
    out = jax.block_until_ready(out)
    ref = _reference_forward(x, params, stride=stride, use_res_connect=use_res)
    np.testing.assert_allclose(np.asarray(out), np.asarray(ref),
                               rtol=RTOL, atol=ATOL)

    # Case 2: stride=1, no residual, Cin != Cout (single row block per image).
    inp, oup, stride, use_res = 4, 8, 1, False
    kx, kp, key = jax.random.split(key, 3)
    x = jax.random.normal(kx, (N, inp, H, W), jnp.float32)
    params = make_params(kp, inp, oup, expand_ratio=6)
    out = inverted_residual_forward(
        x, params, stride=stride, use_res_connect=use_res)
    out = jax.block_until_ready(out)
    ref = _reference_forward(x, params, stride=stride, use_res_connect=use_res)
    np.testing.assert_allclose(np.asarray(out), np.asarray(ref),
                               rtol=RTOL, atol=ATOL)

    print("KERNEL_OK")
</pallas_src>

<mosaic_0001>
module attributes {stable_mosaic.version = 11 : i64} {
  func.func @_inverted_residual_kernel(%arg0: i32, %arg1: i32, %arg2: memref<1x18x18x128xf32, #tpu.memory_space<vmem>>, %arg3: memref<128x128xbf16, #tpu.memory_space<vmem>>, %arg4: memref<1x128xf32, #tpu.memory_space<vmem>>, %arg5: memref<3x3x128xf32, #tpu.memory_space<vmem>>, %arg6: memref<1x128xf32, #tpu.memory_space<vmem>>, %arg7: memref<128x128xbf16, #tpu.memory_space<vmem>>, %arg8: memref<1x128xf32, #tpu.memory_space<vmem>>, %arg9: memref<1x8x16x128xf32, #tpu.memory_space<vmem>>) attributes {dimension_semantics = [#tpu.dimension_semantics<parallel>, #tpu.dimension_semantics<parallel>], iteration_bounds = array<i64: 2, 2>, scalar_prefetch = 0 : i64, scratch_operands = 0 : i64, tpu.core_type = #tpu.core_type<tc>, window_params = [{transform_indices = @transform_0, window_bounds = array<i64: 1, 18, 18, 128>}, {pipeline_mode = #tpu.pipeline_mode<synchronous>, transform_indices = @transform_1, window_bounds = array<i64: 128, 128>}, {pipeline_mode = #tpu.pipeline_mode<synchronous>, transform_indices = @transform_2, window_bounds = array<i64: 1, 128>}, {pipeline_mode = #tpu.pipeline_mode<synchronous>, transform_indices = @transform_3, window_bounds = array<i64: 3, 3, 128>}, {pipeline_mode = #tpu.pipeline_mode<synchronous>, transform_indices = @transform_4, window_bounds = array<i64: 1, 128>}, {pipeline_mode = #tpu.pipeline_mode<synchronous>, transform_indices = @transform_5, window_bounds = array<i64: 128, 128>}, {pipeline_mode = #tpu.pipeline_mode<synchronous>, transform_indices = @transform_6, window_bounds = array<i64: 1, 128>}, {transform_indices = @transform_7, window_bounds = array<i64: 1, 8, 16, 128>}]} {
    %c8_i32 = arith.constant 8 : i32
    %0 = arith.muli %arg1, %c8_i32 : i32
    %c0 = arith.constant 0 : index
    %1 = arith.index_cast %0 : i32 to index
    %c0_0 = arith.constant 0 : index
    %c0_1 = arith.constant 0 : index
    %2 = vector.load %arg2[%c0, %1, %c0_0, %c0_1] : memref<1x18x18x128xf32, #tpu.memory_space<vmem>>, vector<1x10x18x128xf32>
    %3 = vector.shape_cast %2 : vector<1x10x18x128xf32> to vector<10x18x128xf32>
    %4 = vector.shape_cast %3 : vector<10x18x128xf32> to vector<180x128xf32>
    %5 = arith.truncf %4 : vector<180x128xf32> to vector<180x128xbf16>
    %c0_2 = arith.constant 0 : index
    %c0_3 = arith.constant 0 : index
    %6 = vector.load %arg3[%c0_2, %c0_3] : memref<128x128xbf16, #tpu.memory_space<vmem>>, vector<128x128xbf16>
    %cst = arith.constant dense<0.000000e+00> : vector<180x128xf32>
    %7 = tpu.matmul %5, %6, %cst {dimension_numbers = #tpu.dot_dimension_numbers<[1], [0], [0], [1], [0, 0, 1, 1], [], []>} : vector<180x128xbf16>, vector<128x128xbf16>, vector<180x128xf32> -> vector<180x128xf32>
    %c0_4 = arith.constant 0 : index
    %c0_5 = arith.constant 0 : index
    %8 = vector.load %arg4[%c0_4, %c0_5] : memref<1x128xf32, #tpu.memory_space<vmem>>, vector<1x128xf32>
    %9 = vector.shape_cast %8 : vector<1x128xf32> to vector<128xf32>
    %10 = vector.shape_cast %9 : vector<128xf32> to vector<1x128xf32>
    %11 = vector.broadcast %10 : vector<1x128xf32> to vector<180x128xf32>
    %12 = arith.addf %7, %11 : vector<180x128xf32>
    %cst_6 = arith.constant 0.000000e+00 : f32
    %cst_7 = arith.constant 6.000000e+00 : f32
    %13 = vector.broadcast %cst_6 : f32 to vector<180x128xf32>
    %14 = arith.maximumf %13, %12 : vector<180x128xf32>
    %15 = vector.broadcast %cst_7 : f32 to vector<180x128xf32>
    %16 = arith.minimumf %15, %14 : vector<180x128xf32>
    %17 = vector.shape_cast %16 : vector<180x128xf32> to vector<10x18x128xf32>
    %18 = tpu.iota {dimensions = array<i32: 0>} : vector<10x18x1xi32>
    %19 = vector.broadcast %0 : i32 to vector<10x18x1xi32>
    %20 = arith.addi %19, %18 : vector<10x18x1xi32>
    %21 = tpu.iota {dimensions = array<i32: 1>} : vector<10x18x1xi32>
    %c1_i32 = arith.constant 1 : i32
    %22 = vector.broadcast %c1_i32 : i32 to vector<10x18x1xi32>
    %23 = arith.cmpi sge, %20, %22 : vector<10x18x1xi32>
    %c16_i32 = arith.constant 16 : i32
    %24 = vector.broadcast %c16_i32 : i32 to vector<10x18x1xi32>
    %25 = arith.cmpi sle, %20, %24 : vector<10x18x1xi32>
    %26 = arith.andi %23, %25 : vector<10x18x1xi1>
    %c1_i32_8 = arith.constant 1 : i32
    %27 = vector.broadcast %c1_i32_8 : i32 to vector<10x18x1xi32>
    %28 = arith.cmpi sge, %21, %27 : vector<10x18x1xi32>
    %29 = arith.andi %26, %28 : vector<10x18x1xi1>
    %c16_i32_9 = arith.constant 16 : i32
    %30 = vector.broadcast %c16_i32_9 : i32 to vector<10x18x1xi32>
    %31 = arith.cmpi sle, %21, %30 : vector<10x18x1xi32>
    %32 = arith.andi %29, %31 : vector<10x18x1xi1>
    %cst_10 = arith.constant 0.000000e+00 : f32
    %33 = vector.shape_cast %32 : vector<10x18x1xi1> to vector<10x18x1xi1>
    %34 = vector.broadcast %33 : vector<10x18x1xi1> to vector<10x18x128xi1>
    %35 = vector.broadcast %cst_10 : f32 to vector<10x18x128xf32>
    %36 = arith.select %34, %17, %35 : vector<10x18x128xi1>, vector<10x18x128xf32>
    %37 = vector.extract_strided_slice %36 {offsets = [0, 0, 0], sizes = [10, 16, 128], strides = [1, 1, 1]} : vector<10x18x128xf32> to vector<10x16x128xf32>
    %38 = vector.extract_strided_slice %36 {offsets = [0, 1, 0], sizes = [10, 16, 128], strides = [1, 1, 1]} : vector<10x18x128xf32> to vector<10x16x128xf32>
    %39 = vector.extract_strided_slice %36 {offsets = [0, 2, 0], sizes = [10, 16, 128], strides = [1, 1, 1]} : vector<10x18x128xf32> to vector<10x16x128xf32>
    %c0_11 = arith.constant 0 : index
    %c0_12 = arith.constant 0 : index
    %c0_13 = arith.constant 0 : index
    %40 = vector.load %arg5[%c0_11, %c0_12, %c0_13] : memref<3x3x128xf32, #tpu.memory_space<vmem>>, vector<3x3x128xf32>
    %41 = vector.extract_strided_slice %37 {offsets = [0, 0, 0], sizes = [8, 16, 128], strides = [1, 1, 1]} : vector<10x16x128xf32> to vector<8x16x128xf32>
    %42 = vector.extract_strided_slice %40 {offsets = [0, 0, 0], sizes = [1, 1, 128], strides = [1, 1, 1]} : vector<3x3x128xf32> to vector<1x1x128xf32>
    %43 = vector.shape_cast %42 : vector<1x1x128xf32> to vector<128xf32>
    %44 = vector.shape_cast %43 : vector<128xf32> to vector<1x1x128xf32>
    %45 = vector.broadcast %44 : vector<1x1x128xf32> to vector<8x16x128xf32>
    %46 = arith.mulf %41, %45 : vector<8x16x128xf32>
    %47 = vector.extract_strided_slice %38 {offsets = [0, 0, 0], sizes = [8, 16, 128], strides = [1, 1, 1]} : vector<10x16x128xf32> to vector<8x16x128xf32>
    %48 = vector.extract_strided_slice %40 {offsets = [0, 1, 0], sizes = [1, 1, 128], strides = [1, 1, 1]} : vector<3x3x128xf32> to vector<1x1x128xf32>
    %49 = vector.shape_cast %48 : vector<1x1x128xf32> to vector<128xf32>
    %50 = vector.shape_cast %49 : vector<128xf32> to vector<1x1x128xf32>
    %51 = vector.broadcast %50 : vector<1x1x128xf32> to vector<8x16x128xf32>
    %52 = arith.mulf %47, %51 : vector<8x16x128xf32>
    %53 = arith.addf %46, %52 : vector<8x16x128xf32>
    %54 = vector.extract_strided_slice %39 {offsets = [0, 0, 0], sizes = [8, 16, 128], strides = [1, 1, 1]} : vector<10x16x128xf32> to vector<8x16x128xf32>
    %55 = vector.extract_strided_slice %40 {offsets = [0, 2, 0], sizes = [1, 1, 128], strides = [1, 1, 1]} : vector<3x3x128xf32> to vector<1x1x128xf32>
    %56 = vector.shape_cast %55 : vector<1x1x128xf32> to vector<128xf32>
    %57 = vector.shape_cast %56 : vector<128xf32> to vector<1x1x128xf32>
    %58 = vector.broadcast %57 : vector<1x1x128xf32> to vector<8x16x128xf32>
    %59 = arith.mulf %54, %58 : vector<8x16x128xf32>
    %60 = arith.addf %53, %59 : vector<8x16x128xf32>
    %61 = vector.extract_strided_slice %37 {offsets = [1, 0, 0], sizes = [8, 16, 128], strides = [1, 1, 1]} : vector<10x16x128xf32> to vector<8x16x128xf32>
    %62 = vector.extract_strided_slice %40 {offsets = [1, 0, 0], sizes = [1, 1, 128], strides = [1, 1, 1]} : vector<3x3x128xf32> to vector<1x1x128xf32>
    %63 = vector.shape_cast %62 : vector<1x1x128xf32> to vector<128xf32>
    %64 = vector.shape_cast %63 : vector<128xf32> to vector<1x1x128xf32>
    %65 = vector.broadcast %64 : vector<1x1x128xf32> to vector<8x16x128xf32>
    %66 = arith.mulf %61, %65 : vector<8x16x128xf32>
    %67 = arith.addf %60, %66 : vector<8x16x128xf32>
    %68 = vector.extract_strided_slice %38 {offsets = [1, 0, 0], sizes = [8, 16, 128], strides = [1, 1, 1]} : vector<10x16x128xf32> to vector<8x16x128xf32>
    %69 = vector.extract_strided_slice %40 {offsets = [1, 1, 0], sizes = [1, 1, 128], strides = [1, 1, 1]} : vector<3x3x128xf32> to vector<1x1x128xf32>
    %70 = vector.shape_cast %69 : vector<1x1x128xf32> to vector<128xf32>
    %71 = vector.shape_cast %70 : vector<128xf32> to vector<1x1x128xf32>
    %72 = vector.broadcast %71 : vector<1x1x128xf32> to vector<8x16x128xf32>
    %73 = arith.mulf %68, %72 : vector<8x16x128xf32>
    %74 = arith.addf %67, %73 : vector<8x16x128xf32>
    %75 = vector.extract_strided_slice %39 {offsets = [1, 0, 0], sizes = [8, 16, 128], strides = [1, 1, 1]} : vector<10x16x128xf32> to vector<8x16x128xf32>
    %76 = vector.extract_strided_slice %40 {offsets = [1, 2, 0], sizes = [1, 1, 128], strides = [1, 1, 1]} : vector<3x3x128xf32> to vector<1x1x128xf32>
    %77 = vector.shape_cast %76 : vector<1x1x128xf32> to vector<128xf32>
    %78 = vector.shape_cast %77 : vector<128xf32> to vector<1x1x128xf32>
    %79 = vector.broadcast %78 : vector<1x1x128xf32> to vector<8x16x128xf32>
    %80 = arith.mulf %75, %79 : vector<8x16x128xf32>
    %81 = arith.addf %74, %80 : vector<8x16x128xf32>
    %82 = vector.extract_strided_slice %37 {offsets = [2, 0, 0], sizes = [8, 16, 128], strides = [1, 1, 1]} : vector<10x16x128xf32> to vector<8x16x128xf32>
    %83 = vector.extract_strided_slice %40 {offsets = [2, 0, 0], sizes = [1, 1, 128], strides = [1, 1, 1]} : vector<3x3x128xf32> to vector<1x1x128xf32>
    %84 = vector.shape_cast %83 : vector<1x1x128xf32> to vector<128xf32>
    %85 = vector.shape_cast %84 : vector<128xf32> to vector<1x1x128xf32>
    %86 = vector.broadcast %85 : vector<1x1x128xf32> to vector<8x16x128xf32>
    %87 = arith.mulf %82, %86 : vector<8x16x128xf32>
    %88 = arith.addf %81, %87 : vector<8x16x128xf32>
    %89 = vector.extract_strided_slice %38 {offsets = [2, 0, 0], sizes = [8, 16, 128], strides = [1, 1, 1]} : vector<10x16x128xf32> to vector<8x16x128xf32>
    %90 = vector.extract_strided_slice %40 {offsets = [2, 1, 0], sizes = [1, 1, 128], strides = [1, 1, 1]} : vector<3x3x128xf32> to vector<1x1x128xf32>
    %91 = vector.shape_cast %90 : vector<1x1x128xf32> to vector<128xf32>
    %92 = vector.shape_cast %91 : vector<128xf32> to vector<1x1x128xf32>
    %93 = vector.broadcast %92 : vector<1x1x128xf32> to vector<8x16x128xf32>
    %94 = arith.mulf %89, %93 : vector<8x16x128xf32>
    %95 = arith.addf %88, %94 : vector<8x16x128xf32>
    %96 = vector.extract_strided_slice %39 {offsets = [2, 0, 0], sizes = [8, 16, 128], strides = [1, 1, 1]} : vector<10x16x128xf32> to vector<8x16x128xf32>
    %97 = vector.extract_strided_slice %40 {offsets = [2, 2, 0], sizes = [1, 1, 128], strides = [1, 1, 1]} : vector<3x3x128xf32> to vector<1x1x128xf32>
    %98 = vector.shape_cast %97 : vector<1x1x128xf32> to vector<128xf32>
    %99 = vector.shape_cast %98 : vector<128xf32> to vector<1x1x128xf32>
    %100 = vector.broadcast %99 : vector<1x1x128xf32> to vector<8x16x128xf32>
    %101 = arith.mulf %96, %100 : vector<8x16x128xf32>
    %102 = arith.addf %95, %101 : vector<8x16x128xf32>
    %c0_14 = arith.constant 0 : index
    %c0_15 = arith.constant 0 : index
    %103 = vector.load %arg6[%c0_14, %c0_15] : memref<1x128xf32, #tpu.memory_space<vmem>>, vector<1x128xf32>
    %104 = vector.shape_cast %103 : vector<1x128xf32> to vector<128xf32>
    %105 = vector.shape_cast %104 : vector<128xf32> to vector<1x1x128xf32>
    %106 = vector.broadcast %105 : vector<1x1x128xf32> to vector<8x16x128xf32>
    %107 = arith.addf %102, %106 : vector<8x16x128xf32>
    %cst_16 = arith.constant 0.000000e+00 : f32
    %cst_17 = arith.constant 6.000000e+00 : f32
    %108 = vector.broadcast %cst_16 : f32 to vector<8x16x128xf32>
    %109 = arith.maximumf %108, %107 : vector<8x16x128xf32>
    %110 = vector.broadcast %cst_17 : f32 to vector<8x16x128xf32>
    %111 = arith.minimumf %110, %109 : vector<8x16x128xf32>
    %112 = vector.shape_cast %111 : vector<8x16x128xf32> to vector<128x128xf32>
    %113 = arith.truncf %112 : vector<128x128xf32> to vector<128x128xbf16>
    %c0_18 = arith.constant 0 : index
    %c0_19 = arith.constant 0 : index
    %114 = vector.load %arg7[%c0_18, %c0_19] : memref<128x128xbf16, #tpu.memory_space<vmem>>, vector<128x128xbf16>
    %cst_20 = arith.constant dense<0.000000e+00> : vector<128x128xf32>
    %115 = tpu.matmul %113, %114, %cst_20 {dimension_numbers = #tpu.dot_dimension_numbers<[1], [0], [0], [1], [0, 0, 1, 1], [], []>} : vector<128x128xbf16>, vector<128x128xbf16>, vector<128x128xf32> -> vector<128x128xf32>
    %c0_21 = arith.constant 0 : index
    %c0_22 = arith.constant 0 : index
    %116 = vector.load %arg8[%c0_21, %c0_22] : memref<1x128xf32, #tpu.memory_space<vmem>>, vector<1x128xf32>
    %117 = vector.shape_cast %116 : vector<1x128xf32> to vector<128xf32>
    %118 = vector.shape_cast %117 : vector<128xf32> to vector<1x128xf32>
    %119 = vector.broadcast %118 : vector<1x128xf32> to vector<128x128xf32>
    %120 = arith.addf %115, %119 : vector<128x128xf32>
    %121 = vector.shape_cast %120 : vector<128x128xf32> to vector<8x16x128xf32>
    %122 = vector.extract_strided_slice %3 {offsets = [1, 1, 0], sizes = [8, 16, 128], strides = [1, 1, 1]} : vector<10x18x128xf32> to vector<8x16x128xf32>
    %123 = arith.addf %121, %122 : vector<8x16x128xf32>
    %c0_23 = arith.constant 0 : index
    %c0_24 = arith.constant 0 : index
    %c0_25 = arith.constant 0 : index
    %c0_26 = arith.constant 0 : index
    %124 = vector.load %arg9[%c0_23, %c0_24, %c0_25, %c0_26] : memref<1x8x16x128xf32, #tpu.memory_space<vmem>>, vector<1x8x16x128xf32>
    %125 = vector.shape_cast %124 : vector<1x8x16x128xf32> to vector<8x16x128xf32>
    %126 = vector.shape_cast %123 : vector<8x16x128xf32> to vector<1x8x16x128xf32>
    tpu.vector_store %arg9[%c0_23, %c0_24, %c0_25, %c0_26], %126 {strides = array<i32>} : memref<1x8x16x128xf32, #tpu.memory_space<vmem>>, vector<1x8x16x128xf32>,
    return
  }
  func.func @transform_0(%arg0: i32, %arg1: i32) -> (i32, i32, i32, i32) {
    %c0_i32 = arith.constant 0 : i32
    %c0_i32_0 = arith.constant 0 : i32
    %c0_i32_1 = arith.constant 0 : i32
    %c0_i32_2 = arith.constant 0 : i32
    return %arg0, %c0_i32, %c0_i32_0, %c0_i32_1 : i32, i32, i32, i32
  }
  func.func @transform_1(%arg0: i32, %arg1: i32) -> (i32, i32) {
    %c0_i32 = arith.constant 0 : i32
    %c0_i32_0 = arith.constant 0 : i32
    %c0_i32_1 = arith.constant 0 : i32
    return %c0_i32, %c0_i32_0 : i32, i32
  }
  func.func @transform_2(%arg0: i32, %arg1: i32) -> (i32, i32) {
    %c0_i32 = arith.constant 0 : i32
    %c0_i32_0 = arith.constant 0 : i32
    %c0_i32_1 = arith.constant 0 : i32
    return %c0_i32, %c0_i32_0 : i32, i32
  }
  func.func @transform_3(%arg0: i32, %arg1: i32) -> (i32, i32, i32) {
    %c0_i32 = arith.constant 0 : i32
    %c0_i32_0 = arith.constant 0 : i32
    %c0_i32_1 = arith.constant 0 : i32
    %c0_i32_2 = arith.constant 0 : i32
    return %c0_i32, %c0_i32_0, %c0_i32_1 : i32, i32, i32
  }
  func.func @transform_4(%arg0: i32, %arg1: i32) -> (i32, i32) {
    %c0_i32 = arith.constant 0 : i32
    %c0_i32_0 = arith.constant 0 : i32
    %c0_i32_1 = arith.constant 0 : i32
    return %c0_i32, %c0_i32_0 : i32, i32
  }
  func.func @transform_5(%arg0: i32, %arg1: i32) -> (i32, i32) {
    %c0_i32 = arith.constant 0 : i32
    %c0_i32_0 = arith.constant 0 : i32
    %c0_i32_1 = arith.constant 0 : i32
    return %c0_i32, %c0_i32_0 : i32, i32
  }
  func.func @transform_6(%arg0: i32, %arg1: i32) -> (i32, i32) {
    %c0_i32 = arith.constant 0 : i32
    %c0_i32_0 = arith.constant 0 : i32
    %c0_i32_1 = arith.constant 0 : i32
    return %c0_i32, %c0_i32_0 : i32, i32
  }
  func.func @transform_7(%arg0: i32, %arg1: i32) -> (i32, i32, i32, i32) {
    %c0_i32 = arith.constant 0 : i32
    %c0_i32_0 = arith.constant 0 : i32
    %c0_i32_1 = arith.constant 0 : i32
    return %arg0, %arg1, %c0_i32, %c0_i32_0 : i32, i32, i32, i32
  }
}

</mosaic_0001>

<bundles_post_ra>
// kernel: tpu_custom_call.1
= control target key start
LH: loop header
LB: loop body
LE: loop exit
PB: predicated region body
PF: predicated region fallthrough
CT: control target
= control target key end

     0   :  { %12 = vsyncpa [#allocation3], 0  ;;  %s4101_s0 = inlined_call_operand.vmem [shape: f32[2,18,18,128], index: 0, kind: input, shape index: {}]   ;;  %s4102_s1 = inlined_call_operand.vmem [shape: bf16[128,128], index: 1, kind: input, shape index: {}]   ;;  %s4103_s2 = inlined_call_operand.vmem [shape: f32[1,128], index: 2, kind: input, shape index: {}]   ;;  %s4104_s3 = inlined_call_operand.vmem [shape: f32[3,3,128], index: 3, kind: input, shape index: {}]   ;;  %s4105_s4 = inlined_call_operand.vmem [shape: f32[1,128], index: 4, kind: input, shape index: {}]   ;;  %s4106_s5 = inlined_call_operand.vmem [shape: bf16[128,128], index: 5, kind: input, shape index: {}]   ;;  %s4107_s6 = inlined_call_operand.vmem [shape: f32[1,128], index: 6, kind: input, shape index: {}]   ;;  %s4108_s7 = inlined_call_operand.hbm [shape: f32[2,16,16,128], index: 7, kind: output, shape index: {}]  }
   0x1   :  { %14 = vsyncpa [#allocation3 + $0x1], 0  ;;  %s2713_s24 = smov 0   ;;  %s2715_s25 = smov 0  }
   0x2   :  { %s2717_s26 = smov 0   ;;  %s2719_s27 = smov 0  }
   0x3   :  { %s2721_s28 = smov 0   ;;  %s2723_s29 = smov 0  }
   0x4   :  { %s2725_s30 = smov 0   ;;  %s2727_s8 = smov 0  }
   0x5 LB: > { %s2375_s9 = sadd.s32 4294967295, %s2669_s8   ;;  %s2376_s10 = sadd.s32 4294967294, %s2669_s8   ;;  %s2669_s8 = sphi %s2727_s8, %s20_s8   ;;  %s2665_s30 = sphi %s2725_s30, %s4218_s30   ;;  %s2661_s29 = sphi %s2723_s29, %s4217_s29   ;;  %s2657_s28 = sphi %s2721_s28, %s4216_s28   ;;  %s2653_s27 = sphi %s2719_s27, %s4215_s27   ;;  %s2649_s26 = sphi %s2717_s26, %s4214_s26   ;;  %s2645_s25 = sphi %s2715_s25, %s4213_s25   ;;  %s2641_s24 = sphi %s2713_s24, %s4212_s24  }
   0x6   : > { %s29_s11 = sadd.s32 1, %s2661_s29  ;;  %s32_s12 = sadd.s32 1, %s2665_s30 }
   0x7   : > { %p30_p0 = scmp.ge.s32.totalorder %s29_s11, 2  ;;  %p203_p1 = scmp.ne.s32.totalorder %s2649_s26, %s2645_s25 }
   0x8   : > { %p204_p2 = scmp.eq.s32.totalorder %s2375_s9, 3  ;;  %p209_p5 = scmp.ne.s32.totalorder %s2645_s25, %s2641_s24 }
   0x9   : > { %s4220_s11 = smov (%p30_p0, %s29_s11), 0  ;;  %s4222_s12 = smov (!%p30_p0, %s32_s12), %s2665_s30 }
   0xa   : > { %s189_s13 = ssub.s32 %s2661_s29, %s4220_s11  ;;  %p2764_p3 = por %p204_p2, %p203_p1 }
   0xb   : > { %p34_p4 = scmp.ge.s32.totalorder %s4222_s12, 2  ;;  %p210_p6 = scmp.eq.s32.totalorder %s2376_s10, 3 }
   0xc   : > { %p2379_p7 = scmp.ge.s32.totalorder %s2669_s8, 1  ;;  %p254_p9 = scmp.lt.s32.totalorder %s2669_s8, 5 }
   0xd   : > { %s4224_s12 = smov (%p34_p4, %s4222_s12), 0  ;;  %p2773_p8 = por %p210_p6, %p209_p5 }
   0xe   : > { %4124 = sst [smem:[#allocation5_spill]] %s4224_s12  ;;  %s188_s16 = ssub.s32 %s2665_s30, %s4224_s12 }
   0xf   : > { %s193_s17 = sadd.s32 1, %s2649_s26  ;;  %s190_s18 = sor.u32 %s189_s13, %s188_s16 }
  0x10   : > { %p255_p10 = pnand %p2379_p7, %p254_p9  ;;  %p191_p11 = scmp.eq.s32.totalorder %s190_s18, 0 }
  0x12   : > { %s2782_s19 = scalar_select %p191_p11, %s2649_s26, %s193_s17  }
  0x13   : > { %258 = sbr.rel (%p255_p10) target bundleno = 570 (0x23a), region = 48 }
  0x18   : > { %v2462_v0 = vld [vmem:[%s4102_s1 + $0x38] sm:$0xff]  ;;  %p286_p12 = scmp.lt.s32.totalorder %s2657_s28, 1  ;;  %v2461_v1 = vld [vmem:[%s4102_s1 + $0x30] sm:$0xff]  ;;  %s2383_s10 = smul.u32 192, %s2653_s27  ;;  %v2460_v2 = vld [vmem:[%s4102_s1 + $0x28] sm:$0xff]  ;;  %vm1268_vm10 = vcmask 1046528  }
  0x19   : > { %638 = vmatpush.bf16.msra.mxu0 %v2462_v0  ;;  %2472 = vmatpush.bf16.msra.mxu2 %v2462_v0  ;;  %v2459_v8 = vld [vmem:[%s4102_s1 + $0x20] sm:$0xff]  ;;  %v2458_v12 = vld [vmem:[%s4102_s1 + $0x18] sm:$0xff]  ;;  %v2457_v14 = vld [vmem:[%s4102_s1 + $0x10] sm:$0xff]  ;;  %vm1390_vm12 = vcmask 1045504   ;;  %s283_s22 = sand.u32 1, %s2645_s25  }
  0x1a   : > { %s287_s9 = scalar_select %p286_p12, %s2657_s28, 1  ;;  %2473 = vmatpush.bf16.msra.mxu3 %v2462_v0  ;;  %v2456_v21 = vld [vmem:[%s4102_s1 + $0x8] sm:$0xff]  ;;  %v2455_v25 = vld [vmem:[%s4102_s1] sm:$0xff] }
  0x1b   : > { %s2380_s23 = sshll.u32 %s283_s22, 7 }
  0x1c   : > { %s2496_s13 = smul.u32 432, %s287_s9  ;;  %s2471_s9 = sshll.u32 %s2653_s27, 4 }
  0x1d   : > { %639 = vmatpush.bf16.msra.mxu0 %v2461_v1  ;;  %2474 = vmatpush.bf16.msra.mxu2 %v2461_v1 }
  0x1e   : > { %s290_s21 = scalar_lea.vmem %s4101_s0, %s2496_s13  ;;  %2475 = vmatpush.bf16.msra.mxu3 %v2461_v1 }
  0x1f   : > { %s2799_s12 = scalar_lea.vmem %s290_s21, %s2383_s10  ;;  %s2451_s10 = sshll.u32 %s2657_s28, 5 }
  0x20   : > { %v295_v3 = vld [vmem:[%s2799_s12] sm:$0xff]  ;;  %v296_v4 = vld [vmem:[%s2799_s12 + $0x8] sm:$0xff]  ;;  %v2810_v13 = vld [vmem:[%s2799_s12 + $0x18] sm:$0xff]  ;;  %s2291_s13 = sadd.s32 %s2471_s9, %s2451_s10  ;;  %s2279_s21 = scalar_lea.sflag [#allocation3], %s283_s22 }
  0x21   : > { %v355_v5 = vrot.slane %v295_v3, 2  ;;  %v356_v6 = vrot.slane %v295_v3, 4  ;;  %v357_v7 = vrot.slane %v295_v3, 6  ;;  %415 = vst [vmem:[#allocation1] ss:$4 sm:$0xff] %v295_v3  ;;  %640 = vmatpush.bf16.msra.mxu0 %v2460_v2  ;;  %v358_v9 = vrot.slane %v296_v4, 2  ;;  %2476 = vmatpush.bf16.msra.mxu2 %v2460_v2 }
  0x22   : > { %423 = vst [vmem:[#allocation1 + $0x20] ss:$4 sm:$0xff] %v296_v4  ;;  %v359_v10 = vrot.slane %v296_v4, 4  ;;  %2477 = vmatpush.bf16.msra.mxu3 %v2460_v2  ;;  %v360_v11 = vrot.slane %v296_v4, 6  ;;  %v297_v15 = vld [vmem:[%s2799_s12 + $0x10] sm:$0x3] }
  0x23   : > { %417 = vst [vmem:[#allocation1 + $0x1] ss:$4 sm:$0xff] %v355_v5  ;;  %v361_v16 = vrot.slane %v2810_v13, 2  ;;  %v2818_v18 = vld [vmem:[%s2799_s12 + $0x20] sm:$0xff]  ;;  %v362_v19 = vrot.slane %v2810_v13, 4  ;;  %v363_v20 = vrot.slane %v2810_v13, 6 }
  0x24   : > { %419 = vst [vmem:[#allocation1 + $0x2] ss:$4 sm:$0xff] %v356_v6  ;;  %v364_v22 = vrot.slane %v2818_v18, 2  ;;  %v365_v24 = vrot.slane %v2818_v18, 4  ;;  %v2833_v26 = vld [vmem:[%s2799_s12 + $0x30] sm:$0xff]  ;;  %v366_v27 = vrot.slane %v2818_v18, 6 }
  0x25   : > { %421 = vst [vmem:[#allocation1 + $0x3] ss:$4 sm:$0xff] %v357_v7  ;;  %641 = vmatpush.bf16.msra.mxu0 %v2459_v8  ;;  %2478 = vmatpush.bf16.msra.mxu2 %v2459_v8  ;;  %v2837_v29 = vld [vmem:[%s2799_s12 + $0x28] sm:$0x3]  ;;  %v367_v31 = vrot.slane %v2833_v26, 2  ;;  %v2841_v32 = vld [vmem:[%s2799_s12 + $0x38] sm:$0xff] }
  0x26   : > { %425 = vst [vmem:[#allocation1 + $0x21] ss:$4 sm:$0xff] %v358_v9  ;;  %2479 = vmatpush.bf16.msra.mxu3 %v2459_v8  ;;  %v368_v33 = vrot.slane %v2833_v26, 4  ;;  %v369_v34 = vrot.slane %v2833_v26, 6  ;;  %v370_v36 = vrot.slane %v2841_v32, 2  ;;  %v371_v37 = vrot.slane %v2841_v32, 4 }
  0x27   : > { %427 = vst [vmem:[#allocation1 + $0x22] ss:$4 sm:$0xff] %v359_v10  ;;  %v2851_v38 = vld [vmem:[%s2799_s12 + $0x48] sm:$0xff]  ;;  %v372_v39 = vrot.slane %v2841_v32, 6  ;;  %v2855_v41 = vld [vmem:[%s2799_s12 + $0x40] sm:$0x3] }
  0x28   : > { %429 = vst [vmem:[#allocation1 + $0x23] ss:$4 sm:$0xff] %v360_v11  ;;  %v373_v42 = vrot.slane %v2851_v38, 2  ;;  %v374_v43 = vrot.slane %v2851_v38, 4  ;;  %v375_v45 = vrot.slane %v2851_v38, 6  ;;  %v2863_v47 = vld [vmem:[%s2799_s12 + $0x50] sm:$0xff] }
  0x29   : > { %642 = vmatpush.bf16.msra.mxu0 %v2458_v12  ;;  %2480 = vmatpush.bf16.msra.mxu2 %v2458_v12  ;;  %v376_v48 = vrot.slane %v2863_v47, 2  ;;  %v377_v49 = vrot.slane %v2863_v47, 4  ;;  %v2869_v50 = vld [vmem:[%s2799_s12 + $0x60] sm:$0xff]  ;;  %v378_v51 = vrot.slane %v2863_v47, 6  ;;  %v2873_v53 = vld [vmem:[%s2799_s12 + $0x58] sm:$0x3] }
  0x2a   : > { %2481 = vmatpush.bf16.msra.mxu3 %v2458_v12  ;;  %v379_v54 = vrot.slane %v2869_v50, 2  ;;  %v380_v55 = vrot.slane %v2869_v50, 4  ;;  %v381_v56 = vrot.slane %v2869_v50, 6  ;;  %v2881_v58 = vld [vmem:[%s2799_s12 + $0x68] sm:$0xff]  ;;  %v2886_v62 = vld [vmem:[%s2799_s12 + $0x78] sm:$0xff]  ;;  %v2898_v5 = vld [vmem:[%s2799_s12 + $0x80] sm:$0xff] }
  0x2b   : > { %v382_v60 = vrot.slane %v2881_v58, 2  ;;  %v383_v61 = vrot.slane %v2881_v58, 4  ;;  %4126 = vst [vmem:[#allocation6_spill] sm:$0xff] %v2886_v62  ;;  %v384_v63 = vrot.slane %v2881_v58, 6  ;;  %v2891_v1 = vld [vmem:[%s2799_s12 + $0x70] sm:$0x3] }
  0x2c   : > { %v430_v17 = vld.sshfl [vmem:[#allocation1] sm:$0xff pattern:$0x73625140]  ;;  %4127 = vst [vmem:[#allocation7_spill] sm:$0xff] %v2891_v1  ;;  %v385_v2 = vrot.slane %v2886_v62, 2  ;;  %v386_v3 = vrot.slane %v2886_v62, 4 }
  0x2d   : > { %432 = vst [vmem:[#allocation1] ss:$4 sm:$0xff] %v297_v15  ;;  %643 = vmatpush.bf16.msra.mxu0 %v2457_v14  ;;  %2482 = vmatpush.bf16.msra.mxu2 %v2457_v14  ;;  %v387_v6 = vrot.slane %v2886_v62, 6  ;;  %v388_v7 = vrot.slane %v2898_v5, 2  ;;  %v389_v9 = vrot.slane %v2898_v5, 4  ;;  %v2904_v10 = vld [vmem:[%s2799_s12 + $0x90] sm:$0xff] }
  0x2e   : > { %433 = vst [vmem:[#allocation1 + $0x1] ss:$4 sm:$0xff] %v2810_v13  ;;  %2483 = vmatpush.bf16.msra.mxu3 %v2457_v14  ;;  %v390_v11 = vrot.slane %v2898_v5, 6  ;;  %v2909_v14 = vld [vmem:[%s2799_s12 + $0x88] sm:$0x3]  ;;  %s2452_s16 = sshll.u32 %s2291_s13, 3 }
  0x2f   : > { %434 = vst [vmem:[#allocation1 + $0x2] ss:$4 sm:$0xff] %v361_v16  ;;  %v431_v23 = vld.sshfl [vmem:[#allocation1 + $0x20] sm:$0xff pattern:$0x73625140]  ;;  %v391_v16 = vrot.slane %v2904_v10, 2  ;;  %s2293_s20 = scalar_lea.hbm %s4108_s7, %s2452_s16 }
  0x30   : > { %435 = vst [vmem:[#allocation1 + $0x3] ss:$4 sm:$0xff] %v362_v19  ;;  %v558_v28 = vpack.c.bf16 %v431_v23, %v430_v17  ;;  %v2915_v19 = vld [vmem:[%s2799_s12 + $0x98] sm:$0xff]  ;;  %s2296_s28 = sshll.u32 %s2293_s20, 4  ;;  %s2595_s16 = scalar_lea.hbm %s4108_s7, 512  ;;  %s2297_s28 = int_to_ptr.hbm [resolvable:$true] %s2296_s28 }
  0x31   : > { %436 = vst [vmem:[#allocation1 + $0x20] ss:$4 sm:$0xff] %v363_v20  ;;  %644 = vmatpush.bf16.msra.mxu0 %v2456_v21  ;;  %2484 = vmatpush.bf16.msra.mxu2 %v2456_v21  ;;  %v392_v20 = vrot.slane %v2904_v10, 4  ;;  %v394_v23 = vrot.slane %v2915_v19, 2 }
  0x32   : > { %437 = vst [vmem:[#allocation1 + $0x21] ss:$4 sm:$0xff] %v2818_v18  ;;  %2485 = vmatpush.bf16.msra.mxu3 %v2456_v21  ;;  %v393_v21 = vrot.slane %v2904_v10, 6 }
  0x33   : > { %438 = vst [vmem:[#allocation1 + $0x22] ss:$4 sm:$0xff] %v364_v22 }
  0x34   : > { %439 = vst [vmem:[#allocation1 + $0x23] ss:$4 sm:$0xff] %v365_v24  ;;  %v395_v24 = vrot.slane %v2915_v19, 4 }
  0x35   : > { %645 = vmatpush.bf16.msra.mxu0 %v2455_v25  ;;  %2486 = vmatpush.bf16.msra.mxu2 %v2455_v25  ;;  %4128 = vst [vmem:[#allocation8_spill] sm:$0xff] %v2898_v5 }
  0x36   : > { %2487 = vmatpush.bf16.msra.mxu3 %v2455_v25  ;;  %4129 = vst [vmem:[#allocation9_spill] sm:$0xff] %v2904_v10  ;;  %v396_v25 = vrot.slane %v2915_v19, 6 }
  0x37   : > { %v440_v30 = vld.sshfl [vmem:[#allocation1] sm:$0xff pattern:$0x73625140]  ;;  %4130 = vst [vmem:[#allocation10_spill] sm:$0xff] %v2909_v14 }
  0x38   : > { %442 = vst [vmem:[#allocation1] ss:$4 sm:$0xff] %v366_v27  ;;  %646 = vmatmul.bf16.vlgmr.msra.gmra.mxu0 %v558_v28  ;;  %v2923_v27 = vld [vmem:[%s2799_s12 + $0xa0] sm:$0x3] }
  0x39   : > { %443 = vst [vmem:[#allocation1 + $0x1] ss:$4 sm:$0xff] %v2837_v29 }
  0x3a   : > { %444 = vst [vmem:[#allocation1 + $0x2] ss:$4 sm:$0xff] %v2833_v26 }
  0x3b   : > { %v441_v35 = vld.sshfl [vmem:[#allocation1 + $0x20] sm:$0xff pattern:$0x73625140]  ;;  %445 = vst [vmem:[#allocation1 + $0x3] ss:$4 sm:$0xff] %v367_v31 }
  0x3c   : > { %446 = vst [vmem:[#allocation1 + $0x20] ss:$4 sm:$0xff] %v368_v33  ;;  %v559_v44 = vpack.c.bf16 %v441_v35, %v440_v30  ;;  %v2927_v30 = vld [vmem:[%s2799_s12 + $0xa8] sm:$0xff]  ;;  %v2933_v35 = vld [vmem:[%s2799_s12 + $0xb0] sm:$0xff] }
  0x3d   : > { %447 = vst [vmem:[#allocation1 + $0x21] ss:$4 sm:$0xff] %v369_v34  ;;  %v397_v34 = vrot.slane %v2927_v30, 2 }
  0x3e   : > { %448 = vst [vmem:[#allocation1 + $0x22] ss:$4 sm:$0xff] %v2841_v32 }
  0x3f   : > { %449 = vst [vmem:[#allocation1 + $0x23] ss:$4 sm:$0xff] %v370_v36  ;;  %v398_v36 = vrot.slane %v2927_v30, 4 }
  0x40   : > { %4131 = vst [vmem:[#allocation11_spill] sm:$0xff] %v2915_v19 }
  0x41   : > { %4132 = vst [vmem:[#allocation12_spill] sm:$0xff] %v2923_v27 }
  0x42   : > { %v450_v40 = vld.sshfl [vmem:[#allocation1] sm:$0xff pattern:$0x73625140]  ;;  %4133 = vst [vmem:[#allocation13_spill] sm:$0xff] %v2927_v30 }
  0x43   : > { %452 = vst [vmem:[#allocation1] ss:$4 sm:$0xff] %v371_v37  ;;  %v399_v37 = vrot.slane %v2927_v30, 6 }
  0x44   : > { %453 = vst [vmem:[#allocation1 + $0x1] ss:$4 sm:$0xff] %v372_v39 }
  0x45   : > { %454 = vst [vmem:[#allocation1 + $0x2] ss:$4 sm:$0xff] %v2855_v41 }
  0x46   : > { %v451_v46 = vld.sshfl [vmem:[#allocation1 + $0x20] sm:$0xff pattern:$0x73625140]  ;;  %455 = vst [vmem:[#allocation1 + $0x3] ss:$4 sm:$0xff] %v2851_v38 }
  0x47   : > { %456 = vst [vmem:[#allocation1 + $0x20] ss:$4 sm:$0xff] %v373_v42  ;;  %v560_v59 = vpack.c.bf16 %v451_v46, %v450_v40  ;;  %v400_v40 = vrot.slane %v2933_v35, 2  ;;  %v401_v42 = vrot.slane %v2933_v35, 4  ;;  %v2945_v46 = vld [vmem:[%s2799_s12 + $0xc0] sm:$0xff] }
  0x48   : > { %457 = vst [vmem:[#allocation1 + $0x21] ss:$4 sm:$0xff] %v374_v43  ;;  %651 = vmatmul.bf16.gmra.mxu0 %v559_v44  ;;  %v402_v43 = vrot.slane %v2933_v35, 6 }
  0x49   : > { %458 = vst [vmem:[#allocation1 + $0x22] ss:$4 sm:$0xff] %v375_v45  ;;  %v2942_v45 = vld [vmem:[%s2799_s12 + $0xb8] sm:$0x3] }
  0x4a   : > { %459 = vst [vmem:[#allocation1 + $0x23] ss:$4 sm:$0xff] %v2863_v47 }
  0x4b   : > { %4134 = vst [vmem:[#allocation14_spill] sm:$0xff] %v2933_v35 }
  0x4c   : > { %4135 = vst [vmem:[#allocation15_spill] sm:$0xff] %v2942_v45 }
  0x4d   : > { %v460_v52 = vld.sshfl [vmem:[#allocation1] sm:$0xff pattern:$0x73625140]  ;;  %4136 = vst [vmem:[#allocation16_spill] sm:$0xff] %v2945_v46 }
  0x4e   : > { %462 = vst [vmem:[#allocation1] ss:$4 sm:$0xff] %v376_v48  ;;  %v403_v48 = vrot.slane %v2945_v46, 2 }
  0x4f   : > { %463 = vst [vmem:[#allocation1 + $0x1] ss:$4 sm:$0xff] %v377_v49  ;;  %v2950_v49 = vld [vmem:[%s2799_s12 + $0xc8] sm:$0xff] }
  0x50   : > { %464 = vst [vmem:[#allocation1 + $0x2] ss:$4 sm:$0xff] %v378_v51  ;;  %v404_v51 = vrot.slane %v2945_v46, 4 }
  0x51   : > { %v461_v57 = vld.sshfl [vmem:[#allocation1 + $0x20] sm:$0xff pattern:$0x73625140]  ;;  %465 = vst [vmem:[#allocation1 + $0x3] ss:$4 sm:$0xff] %v2873_v53 }
  0x52   : > { %466 = vst [vmem:[#allocation1 + $0x20] ss:$4 sm:$0xff] %v2869_v50  ;;  %v561_v12 = vpack.c.bf16 %v461_v57, %v460_v52  ;;  %v407_v57 = vrot.slane %v2950_v49, 4 }
  0x53   : > { %467 = vst [vmem:[#allocation1 + $0x21] ss:$4 sm:$0xff] %v379_v54  ;;  %v405_v54 = vrot.slane %v2945_v46, 6 }
  0x54   : > { %468 = vst [vmem:[#allocation1 + $0x22] ss:$4 sm:$0xff] %v380_v55 }
  0x55   : > { %469 = vst [vmem:[#allocation1 + $0x23] ss:$4 sm:$0xff] %v381_v56  ;;  %v406_v56 = vrot.slane %v2950_v49, 2 }
  0x56   : > { %4137 = vst [vmem:[#allocation17_spill] sm:$0xff] %v2950_v49 }
  0x58   : > { %v470_v0 = vld.sshfl [vmem:[#allocation1] sm:$0xff pattern:$0x73625140]  ;;  %656 = vmatmul.bf16.gmra.mxu0 %v560_v59 }
  0x59   : > { %472 = vst [vmem:[#allocation1] ss:$4 sm:$0xff] %v2881_v58 }
  0x5a   : > { %473 = vst [vmem:[#allocation1 + $0x1] ss:$4 sm:$0xff] %v382_v60  ;;  %v408_v60 = vrot.slane %v2950_v49, 6 }
  0x5b   : > { %474 = vst [vmem:[#allocation1 + $0x2] ss:$4 sm:$0xff] %v383_v61  ;;  %v322_v61 = vld [vmem:[%s2799_s12 + $0xd8] sm:$0xff] }
  0x5c   : > { %v471_v4 = vld.sshfl [vmem:[#allocation1 + $0x20] sm:$0xff pattern:$0x73625140]  ;;  %475 = vst [vmem:[#allocation1 + $0x3] ss:$4 sm:$0xff] %v384_v63 }
  0x5d   : > { %476 = vst [vmem:[#allocation1 + $0x20] ss:$4 sm:$0xff] %v2891_v1  ;;  %v562_v31 = vpack.c.bf16 %v471_v4, %v470_v0  ;;  %v2961_v63 = vld [vmem:[%s2799_s12 + $0xd0] sm:$0x3]  ;;  %v409_v0 = vrot.slane %v322_v61, 2  ;;  %v410_v4 = vrot.slane %v322_v61, 4 }
  0x5e   : > { %477 = vst [vmem:[#allocation1 + $0x21] ss:$4 sm:$0xff] %v2886_v62 }
  0x5f   : > { %478 = vst [vmem:[#allocation1 + $0x22] ss:$4 sm:$0xff] %v385_v2 }
  0x60   : > { %479 = vst [vmem:[#allocation1 + $0x23] ss:$4 sm:$0xff] %v386_v3  ;;  %v323_v3 = vld [vmem:[%s2799_s12 + $0xe0] sm:$0xff] }
  0x61   : > { %4138 = vst [vmem:[#allocation18_spill] sm:$0xff] %v2961_v63 }
  0x63   : > { %v480_v8 = vld.sshfl [vmem:[#allocation1] sm:$0xff pattern:$0x73625140] }
  0x64   : > { %482 = vst [vmem:[#allocation1] ss:$4 sm:$0xff] %v387_v6  ;;  %v411_v6 = vrot.slane %v322_v61, 6 }
  0x65   : > { %483 = vst [vmem:[#allocation1 + $0x1] ss:$4 sm:$0xff] %v2898_v5 }
  0x66   : > { %484 = vst [vmem:[#allocation1 + $0x2] ss:$4 sm:$0xff] %v388_v7  ;;  %v412_v7 = vrot.slane %v323_v3, 2 }
  0x67   : > { %v481_v15 = vld.sshfl [vmem:[#allocation1 + $0x20] sm:$0xff pattern:$0x73625140]  ;;  %485 = vst [vmem:[#allocation1 + $0x3] ss:$4 sm:$0xff] %v389_v9  ;;  %v413_v9 = vrot.slane %v323_v3, 4 }
  0x68   : > { %v563_v17 = vpack.c.bf16 %v481_v15, %v480_v8  ;;  %486 = vst [vmem:[#allocation1 + $0x20] ss:$4 sm:$0xff] %v390_v11  ;;  %661 = vmatmul.bf16.gmra.mxu0 %v561_v12  ;;  %v414_v12 = vrot.slane %v323_v3, 6  ;;  %v324_v15 = vld [vmem:[%s2799_s12 + $0xe8] sm:$0x3]  ;;  %s2382_s12 = sshll.u32 %s2653_s27, 3 }
  0x69   : > { %487 = vst [vmem:[#allocation1 + $0x21] ss:$4 sm:$0xff] %v2909_v14 }
  0x6a   : > { %671 = vmatmul.bf16.vlgmr.msra.gmra.mxu2 %v563_v17  ;;  %488 = vst [vmem:[#allocation1 + $0x22] ss:$4 sm:$0xff] %v2904_v10 }
  0x6b   : > { %489 = vst [vmem:[#allocation1 + $0x23] ss:$4 sm:$0xff] %v391_v16 }
  0x6e   : > { %v490_v22 = vld.sshfl [vmem:[#allocation1] sm:$0xff pattern:$0x73625140] }
  0x6f   : > { %492 = vst [vmem:[#allocation1] ss:$4 sm:$0xff] %v392_v20 }
  0x70   : > { %493 = vst [vmem:[#allocation1 + $0x1] ss:$4 sm:$0xff] %v393_v21 }
  0x71   : > { %494 = vst [vmem:[#allocation1 + $0x2] ss:$4 sm:$0xff] %v2915_v19 }
  0x72   : > { %v491_v28 = vld.sshfl [vmem:[#allocation1 + $0x20] sm:$0xff pattern:$0x73625140]  ;;  %495 = vst [vmem:[#allocation1 + $0x3] ss:$4 sm:$0xff] %v394_v23 }
  0x73   : > { %496 = vst [vmem:[#allocation1 + $0x20] ss:$4 sm:$0xff] %v395_v24  ;;  %v564_v33 = vpack.c.bf16 %v491_v28, %v490_v22  ;;  %v2969_v24 = vld [vmem:[%s4103_s2] ss:$0 sm:$0xff] }
  0x74   : > { %497 = vst [vmem:[#allocation1 + $0x21] ss:$4 sm:$0xff] %v396_v25 }
  0x75   : > { %498 = vst [vmem:[#allocation1 + $0x22] ss:$4 sm:$0xff] %v2923_v27 }
  0x76   : > { %499 = vst [vmem:[#allocation1 + $0x23] ss:$4 sm:$0xff] %v2927_v30 }
  0x78   : > { %666 = vmatmul.bf16.gmra.mxu0 %v562_v31 }
  0x79   : > { %v500_v39 = vld.sshfl [vmem:[#allocation1] sm:$0xff pattern:$0x73625140] }
  0x7a   : > { %676 = vmatmul.bf16.gmra.mxu2 %v564_v33  ;;  %502 = vst [vmem:[#allocation1] ss:$4 sm:$0xff] %v397_v34 }
  0x7b   : > { %503 = vst [vmem:[#allocation1 + $0x1] ss:$4 sm:$0xff] %v398_v36 }
  0x7c   : > { %504 = vst [vmem:[#allocation1 + $0x2] ss:$4 sm:$0xff] %v399_v37 }
  0x7d   : > { %v501_v44 = vld.sshfl [vmem:[#allocation1 + $0x20] sm:$0xff pattern:$0x73625140]  ;;  %505 = vst [vmem:[#allocation1 + $0x3] ss:$4 sm:$0xff] %v2933_v35 }
  0x7e   : > { %506 = vst [vmem:[#allocation1 + $0x20] ss:$4 sm:$0xff] %v400_v40  ;;  %v565_v55 = vpack.c.bf16 %v501_v44, %v500_v39  ;;  %v852_v44 = vlaneseq }
  0x7f   : > { %507 = vst [vmem:[#allocation1 + $0x21] ss:$4 sm:$0xff] %v401_v42 }
  0x80   : > { %508 = vst [vmem:[#allocation1 + $0x22] ss:$4 sm:$0xff] %v402_v43 }
  0x81   : > { %509 = vst [vmem:[#allocation1 + $0x23] ss:$4 sm:$0xff] %v2942_v45 }
  0x84   : > { %v510_v52 = vld.sshfl [vmem:[#allocation1] sm:$0xff pattern:$0x73625140] }
  0x85   : > { %512 = vst [vmem:[#allocation1] ss:$4 sm:$0xff] %v2945_v46 }
  0x86   : > { %513 = vst [vmem:[#allocation1 + $0x1] ss:$4 sm:$0xff] %v403_v48 }
  0x87   : > { %514 = vst [vmem:[#allocation1 + $0x2] ss:$4 sm:$0xff] %v404_v51 }
  0x88   : > { %v511_v59 = vld.sshfl [vmem:[#allocation1 + $0x20] sm:$0xff pattern:$0x73625140]  ;;  %515 = vst [vmem:[#allocation1 + $0x3] ss:$4 sm:$0xff] %v405_v54  ;;  %v2974_v54 = vstv %s2382_s12  ;;  %s3992_s12 = scalar_lea.vmem [#allocation2], %s2380_s23 }
  0x89   : > { %516 = vst [vmem:[#allocation1 + $0x20] ss:$4 sm:$0xff] %v2950_v49  ;;  %v566_v11 = vpack.c.bf16 %v511_v59, %v510_v52  ;;  %vm856_vm0 = vcmp.ge.s32.totalorder %v2974_v54, 1  ;;  %vm866_vm1 = vcmp.le.s32.totalorder %v2974_v54, 16  ;;  %s2294_s27 = sshll.u32 %s3992_s12, 4  ;;  %s2589_s23 = sshra.s32 %s2297_s28, 4  ;;  %s2295_s27 = int_to_ptr.vmem [resolvable:$true] %s2294_s27  ;;  %s2590_s23 = int_to_ptr.hbm [resolvable:$true] %s2589_s23 }
  0x8a   : > { %681 = vmatmul.bf16.gmra.mxu2 %v565_v55  ;;  %517 = vst [vmem:[#allocation1 + $0x21] ss:$4 sm:$0xff] %v406_v56  ;;  %vm2984_vm2 = vmand %vm856_vm0, %vm866_vm1  ;;  %s2591_s9 = scalar_lea.hbm %s2590_s23, 128  ;;  %p2596_p2 = scmp.lt.s32.totalorder %s2590_s23, %s4108_s7 }
  0x8b   : > { %518 = vst [vmem:[#allocation1 + $0x22] ss:$4 sm:$0xff] %v407_v57  ;;  %v2977_v57 = vshrl.u32 %v852_v44, 7  ;;  %v2468_v44 = vld [vmem:[%s4106_s5 + $0x28] sm:$0xff]  ;;  %p2592_p13 = scmp.ne.s32.totalorder %s2590_s23, %s2591_s9  ;;  %p2597_p4 = scmp.lt.s32.totalorder %s2595_s16, %s2591_s9 }
  0x8c   : > { %519 = vst [vmem:[#allocation1 + $0x23] ss:$4 sm:$0xff] %v408_v60 }
  0x8d   : > { %vm886_vm3 = vcmp.ge.s32.totalorder %v2977_v57, 1  ;;  %p2593_p0 = pnand %p2592_p13, %p2764_p3  ;;  %p2598_p5 = por %p2597_p4, %p2596_p2 }
  0x8e   : > { %vm889_vm4 = vmand %vm2984_vm2, %vm886_vm3 }
  0x8f   : > { %v520_v2 = vld.sshfl [vmem:[#allocation1] sm:$0xff pattern:$0x73625140]  ;;  %p2594_p1 = pneg %p2593_p0 }
  0x90   : > { %522 = vst [vmem:[#allocation1] ss:$4 sm:$0xff] %v2961_v63 }
  0x91   : > { %523 = vst [vmem:[#allocation1 + $0x1] ss:$4 sm:$0xff] %v322_v61  ;;  %v2982_v61 = vadd.s32 16, %v2977_v57  ;;  %p2599_p6 = pnand %p2598_p5, %p2594_p1 }
  0x92   : > { %524 = vst [vmem:[#allocation1 + $0x2] ss:$4 sm:$0xff] %v409_v0 }
  0x93   : > { %v521_v8 = vld.sshfl [vmem:[#allocation1 + $0x20] sm:$0xff pattern:$0x73625140]  ;;  %525 = vst [vmem:[#allocation1 + $0x3] ss:$4 sm:$0xff] %v410_v4  ;;  %vm921_vm5 = vcmp.le.s32.totalorder %v2982_v61, 16 }
  0x94   : > { %526 = vst [vmem:[#allocation1 + $0x20] ss:$4 sm:$0xff] %v411_v6  ;;  %v567_v21 = vpack.c.bf16 %v521_v8, %v520_v2  ;;  %v1199_v4 = vld [vmem:[%s4104_s3] sm:$0x7]  ;;  %vm924_vm6 = vmand %vm2984_vm2, %vm921_vm5 }
  0x95   : > { %527 = vst [vmem:[#allocation1 + $0x21] ss:$4 sm:$0xff] %v323_v3 }
  0x96   : > { %528 = vst [vmem:[#allocation1 + $0x22] ss:$4 sm:$0xff] %v412_v7 }
  0x97   : > { %529 = vst [vmem:[#allocation1 + $0x23] ss:$4 sm:$0xff] %v413_v9 }
  0x9a   : > { %686 = vmatmul.bf16.gmra.mxu2 %v566_v11  ;;  %v530_v16 = vld.sshfl [vmem:[#allocation1] sm:$0xff pattern:$0x73625140]  ;;  %v2470_v11 = vld [vmem:[%s4106_s5 + $0x38] sm:$0xff] }
  0x9b   : > { %532 = vst [vmem:[#allocation1] ss:$4 sm:$0xff] %v414_v12  ;;  %2141 = vmatpush.bf16.msra.mxu1 %v2470_v11  ;;  %2488 = vmatpush.bf16.msrb.mxu3 %v2470_v11 }
  0x9c   : > { %533 = vst [vmem:[#allocation1 + $0x1] ss:$4 sm:$0xff] %v324_v15  ;;  %v843_v15 = vadd.s32 1, %v2974_v54 }
  0x9e   : > { %v531_v17 = vld.sshfl [vmem:[#allocation1 + $0x20] sm:$0xff pattern:$0x73625140]  ;;  %vm857_vm7 = vcmp.ge.s32.totalorder %v843_v15, 1  ;;  %vm867_vm8 = vcmp.le.s32.totalorder %v843_v15, 16 }
  0x9f   : > { %v568_v20 = vpack.c.bf16 %v531_v17, %v530_v16  ;;  %v3002_v16 = vperm.slane %v1199_v4, 1  ;;  %vm3024_vm9 = vmand %vm857_vm7, %vm867_vm8 }
  0xa0   : > { %vm3038_vm11 = vmand %vm3024_vm9, %vm886_vm3 }
  0xa1   : > { %696 = vmatmul.bf16.vlgmr.msra.gmra.mxu3 %v568_v20  ;;  %vm3098_vm15 = vmand %vm3024_vm9, %vm921_vm5 }
  0xa3   : > { %v534_v22 = vld.sshfl [vmem:[#allocation1] sm:$0xff pattern:$0x73625140] }
  0xa4   : > { %v569_v23 = vpack.c.bf16 %v534_v22, %v534_v22 }
  0xaa   : > { %691 = vmatmul.bf16.gmra.mxu2 %v567_v21 }
  0xb1   : > { %701 = vmatmul.bf16.gmra.mxu3 %v569_v23  ;;  %v2469_v23 = vld [vmem:[%s4106_s5 + $0x30] sm:$0xff] }
  0xb2   : > { %2142 = vmatpush.bf16.msra.mxu1 %v2469_v23  ;;  %2489 = vmatpush.bf16.msrb.mxu3 %v2469_v23 }
  0xb5   : > { %v647_v25 = vpop.f32.mrf.mxu0 }
  0xb6   : > { %v648_v28 = vadd.f32 %v2969_v24, %v647_v25  ;;  %2143 = vmatpush.bf16.msra.mxu1 %v2468_v44  ;;  %2490 = vmatpush.bf16.msrb.mxu3 %v2468_v44 }
  0xb8   : > { %v706_v31 = vmax.f32 %v648_v28, 0.0 }
  0xba   : > { %v729_v33 = vmin.f32 %v706_v31, 6.0 }
  0xbc   : > { %v775_v34 = vrot.slane %v729_v33, 2  ;;  %v776_v36 = vrot.slane %v729_v33, 4  ;;  %v777_v37 = vrot.slane %v729_v33, 6  ;;  %1012 = vst [vmem:[#allocation1] ss:$4 sm:$0xff] %v729_v33 }
  0xbd   : > { %v649_v39 = vpop.f32.mrf.mxu0 }
  0xbe   : > { %1014 = vst [vmem:[#allocation1 + $0x1] ss:$4 sm:$0xff] %v775_v34  ;;  %v650_v40 = vadd.f32 %v2969_v24, %v649_v39 }
  0xbf   : > { %1016 = vst [vmem:[#allocation1 + $0x2] ss:$4 sm:$0xff] %v776_v36 }
  0xc0   : > { %1018 = vst [vmem:[#allocation1 + $0x3] ss:$4 sm:$0xff] %v777_v37  ;;  %v707_v42 = vmax.f32 %v650_v40, 0.0 }
  0xc2   : > { %v730_v43 = vmin.f32 %v707_v42, 6.0  ;;  %v3016_v42 = vperm.slane %v1199_v4, 2 }
  0xc4   : > { %v778_v48 = vrot.slane %v730_v43, 2  ;;  %v779_v51 = vrot.slane %v730_v43, 4  ;;  %v780_v52 = vrot.slane %v730_v43, 6  ;;  %1020 = vst [vmem:[#allocation1 + $0x20] ss:$4 sm:$0xff] %v730_v43 }
  0xc5   : > { %v652_v55 = vpop.f32.mrf.mxu0 }
  0xc6   : > { %1022 = vst [vmem:[#allocation1 + $0x21] ss:$4 sm:$0xff] %v778_v48  ;;  %v653_v56 = vadd.f32 %v2969_v24, %v652_v55  ;;  %v3031_v55 = vperm.slane %v1199_v4, 0  ;;  %v3114_v48 = vadd.s32 3, %v2974_v54 }
  0xc7   : > { %1024 = vst [vmem:[#allocation1 + $0x22] ss:$4 sm:$0xff] %v779_v51  ;;  %v1027_v2 = vld.sshfl [vmem:[#allocation1] sm:$0xff pattern:$0x73625140] }
  0xc8   : > { %1026 = vst [vmem:[#allocation1 + $0x23] ss:$4 sm:$0xff] %v780_v52  ;;  %v708_v59 = vmax.f32 %v653_v56, 0.0  ;;  %v1169_v20 = vsel %vm889_vm4, %v1027_v2, 0.0  ;;  %v1200_v51 = vld [vmem:[%s4104_s3 + $0x4] sm:$0x7] }
  0xc9   : > { %v1220_v31 = vmul.f32 %v3002_v16, %v1169_v20  ;;  %vm869_vm4 = vcmp.le.s32.totalorder %v3114_v48, 16 }
  0xca   : > { %v731_v60 = vmin.f32 %v708_v59, 6.0 }
  0xcc   : > { %v781_v3 = vrot.slane %v731_v60, 2  ;;  %1029 = vst [vmem:[#allocation1] ss:$4 sm:$0xff] %v731_v60  ;;  %v782_v6 = vrot.slane %v731_v60, 4  ;;  %v783_v8 = vrot.slane %v731_v60, 6  ;;  %v1269_v60 = vrot.slane %v1220_v31, 1 }
  0xcd   : > { %v654_v7 = vpop.f32.mrf.mxu0 }
  0xce   : > { %v655_v9 = vadd.f32 %v2969_v24, %v654_v7 }
  0xcf   : > { %v1028_v12 = vld.sshfl [vmem:[#allocation1 + $0x20] sm:$0xff pattern:$0x73625140] }
  0xd0   : > { %1031 = vst [vmem:[#allocation1 + $0x20] ss:$4 sm:$0xff] %v781_v3  ;;  %v709_v17 = vmax.f32 %v655_v9, 0.0  ;;  %v1170_v21 = vsel %vm2984_vm2, %v1028_v12, 0.0  ;;  %v1342_v3 = vmul.f32 %v3016_v42, %v1169_v20  ;;  %v3050_v9 = vadd.s32 2, %v2974_v54 }
  0xd1   : > { %1032 = vst [vmem:[#allocation1 + $0x21] ss:$4 sm:$0xff] %v782_v6  ;;  %v1221_v25 = vmul.f32 %v3002_v16, %v1170_v21  ;;  %v1343_v0 = vmul.f32 %v3016_v42, %v1170_v21  ;;  %v3044_v6 = vperm.slane %v1200_v51, 1  ;;  %v3053_v12 = vperm.slane %v1200_v51, 2 }
  0xd2   : > { %1033 = vst [vmem:[#allocation1 + $0x22] ss:$4 sm:$0xff] %v783_v8  ;;  %v732_v22 = vmin.f32 %v709_v17, 6.0  ;;  %v2467_v8 = vld [vmem:[%s4106_s5 + $0x20] sm:$0xff]  ;;  %v1201_v17 = vld [vmem:[%s4104_s3 + $0x8] sm:$0x7] }
  0xd3   : > { %v1030_v28 = vld.sshfl [vmem:[#allocation1] sm:$0xff pattern:$0x73625140]  ;;  %v1270_v52 = vrot.slane %v1221_v25, 1  ;;  %v3060_v25 = vperm.slane %v1200_v51, 0  ;;  %2144 = vmatpush.bf16.msra.mxu1 %v2467_v8  ;;  %2491 = vmatpush.bf16.msrb.mxu3 %v2467_v8  ;;  %vm858_vm13 = vcmp.ge.s32.totalorder %v3050_v9, 1 }
  0xd4   : > { %v784_v33 = vrot.slane %v732_v22, 2  ;;  %v785_v34 = vrot.slane %v732_v22, 4  ;;  %v786_v36 = vrot.slane %v732_v22, 6  ;;  %1034 = vst [vmem:[#allocation1 + $0x23] ss:$4 sm:$0xff] %v732_v22  ;;  %v1171_v37 = vsel %vm924_vm6, %v1030_v28, 0.0 }
  0xd5   : > { %v657_v39 = vpop.f32.mrf.mxu0  ;;  %v1222_v40 = vmul.f32 %v3002_v16, %v1171_v37  ;;  %v1344_v4 = vmul.f32 %v3016_v42, %v1171_v37  ;;  %v1271_v11 = vsel %vm1268_vm10, %v1269_v60, %v1270_v52  ;;  %v1203_v22 = vmul.f32 %v3031_v55, %v1169_v20 }
  0xd6   : > { %1036 = vst [vmem:[#allocation1] ss:$4 sm:$0xff] %v784_v33  ;;  %v658_v43 = vadd.f32 %v2969_v24, %v657_v39  ;;  %v1204_v33 = vmul.f32 %v3031_v55, %v1170_v21  ;;  %v1391_v39 = vrot.slane %v1342_v3, 2  ;;  %vm868_vm14 = vcmp.le.s32.totalorder %v3050_v9, 16  ;;  %v2463_v9 = vld [vmem:[%s4106_s5] sm:$0xff] }
  0xd7   : > { %1037 = vst [vmem:[#allocation1 + $0x1] ss:$4 sm:$0xff] %v785_v34  ;;  %v1272_v56 = vrot.slane %v1222_v40, 1  ;;  %v1392_v34 = vrot.slane %v1343_v0, 2  ;;  %v1325_v37 = vadd.f32 %v1271_v11, %v1203_v22  ;;  %v1394_v40 = vrot.slane %v1344_v4, 2  ;;  %vm3128_vm0 = vmand %vm858_vm13, %vm868_vm14 }
  0xd8   : > { %1038 = vst [vmem:[#allocation1 + $0x2] ss:$4 sm:$0xff] %v786_v36  ;;  %v710_v59 = vmax.f32 %v658_v43, 0.0  ;;  %v2466_v43 = vld [vmem:[%s4106_s5 + $0x18] sm:$0xff]  ;;  %v3085_v3 = vperm.slane %v1201_v17, 1  ;;  %v3087_v4 = vperm.slane %v1201_v17, 2  ;;  %vm3150_vm1 = vmand %vm3128_vm0, %vm886_vm3 }
  0xd9   : > { %v1273_v23 = vsel %vm1268_vm10, %v1270_v52, %v1272_v56  ;;  %v3076_v56 = vperm.slane %v1201_v17, 0  ;;  %2145 = vmatpush.bf16.msra.mxu1 %v2466_v43  ;;  %v1393_v2 = vsel %vm1390_vm12, %v1391_v39, %v1392_v34  ;;  %2492 = vmatpush.bf16.msrb.mxu3 %v2466_v43  ;;  %v2465_v39 = vld [vmem:[%s4106_s5 + $0x10] sm:$0xff]  ;;  %vm859_vm2 = vcmp.ge.s32.totalorder %v3114_v48, 1  ;;  %vm3189_vm6 = vmand %vm3128_vm0, %vm921_vm5  ;;  %v3253_v48 = vld [vmem:[%s4105_s4] ss:$0 sm:$0xff] }
  0xda   : > { %v733_v7 = vmin.f32 %v710_v59, 6.0  ;;  %v1326_v44 = vadd.f32 %v1273_v23, %v1204_v33  ;;  %v1447_v22 = vadd.f32 %v1393_v2, %v1325_v37  ;;  %vm3243_vm7 = vmand %vm859_vm2, %vm869_vm4 }
  0xdb   : > { %v1035_v15 = vld.sshfl [vmem:[#allocation1 + $0x20] sm:$0xff pattern:$0x73625140]  ;;  %vm3261_vm8 = vmand %vm3243_vm7, %vm886_vm3 }
  0xdc   : > { %v787_v28 = vrot.slane %v733_v7, 2  ;;  %1039 = vst [vmem:[#allocation1 + $0x3] ss:$4 sm:$0xff] %v733_v7  ;;  %v1172_v31 = vsel %vm3038_vm11, %v1035_v15, 0.0  ;;  %v788_v8 = vrot.slane %v733_v7, 4  ;;  %v789_v11 = vrot.slane %v733_v7, 6 }
  0xdd   : > { %v659_v36 = vpop.f32.mrf.mxu0  ;;  %v1497_v21 = vmul.f32 %v3044_v6, %v1172_v31  ;;  %v3073_v51 = vmul.f32 %v3053_v12, %v1172_v31  ;;  %v1464_v52 = vmul.f32 %v3060_v25, %v1172_v31  ;;  %v3079_v59 = vmul.f32 %v3002_v16, %v1172_v31  ;;  %2146 = vmatpush.bf16.msra.mxu1 %v2465_v39 }
  0xde   : > { %1040 = vst [vmem:[#allocation1 + $0x20] ss:$4 sm:$0xff] %v787_v28  ;;  %v660_v20 = vadd.f32 %v2969_v24, %v659_v36  ;;  %v3082_v60 = vmul.f32 %v3016_v42, %v1172_v31  ;;  %v1395_v15 = vsel %vm1390_vm12, %v1392_v34, %v1394_v40  ;;  %v1205_v34 = vmul.f32 %v3031_v55, %v1172_v31 }
  0xdf   : > { %v1448_v28 = vadd.f32 %v1395_v15, %v1326_v44  ;;  %v1545_v33 = vrot.slane %v1497_v21, 1  ;;  %v1666_v36 = vrot.slane %v3073_v51, 2  ;;  %v1480_v7 = vadd.f32 %v1464_v52, %v1447_v22  ;;  %2493 = vmatpush.bf16.msrb.mxu3 %v2465_v39 }
  0xe0   : > { %v711_v0 = vmax.f32 %v660_v20, 0.0  ;;  %v1274_v37 = vrot.slane %v3079_v59, 1 }
  0xe2   : > { %v734_v23 = vmin.f32 %v711_v0, 6.0 }
  0xe3   : > { %v1041_v63 = vld.sshfl [vmem:[#allocation1] sm:$0xff pattern:$0x73625140] }
  0xe4   : > { %1043 = vst [vmem:[#allocation1] ss:$4 sm:$0xff] %v788_v8  ;;  %v790_v20 = vrot.slane %v734_v23, 2  ;;  %v791_v43 = vrot.slane %v734_v23, 4  ;;  %v792_v44 = vrot.slane %v734_v23, 6  ;;  %v1173_v21 = vsel %vm3024_vm9, %v1041_v63, 0.0  ;;  %vm3293_vm9 = vmand %vm3243_vm7, %vm921_vm5 }
  0xe5   : > { %v1042_v51 = vld.sshfl [vmem:[#allocation1 + $0x20] sm:$0xff pattern:$0x73625140]  ;;  %1044 = vst [vmem:[#allocation1 + $0x1] ss:$4 sm:$0xff] %v789_v11  ;;  %v662_v0 = vpop.f32.mrf.mxu0  ;;  %v1465_v2 = vmul.f32 %v3060_v25, %v1173_v21  ;;  %v1498_v52 = vmul.f32 %v3044_v6, %v1173_v21  ;;  %v1619_v31 = vmul.f32 %v3053_v12, %v1173_v21  ;;  %v1224_v63 = vmul.f32 %v3002_v16, %v1173_v21  ;;  %v2464_v11 = vld [vmem:[%s4106_s5 + $0x8] sm:$0xff] }
  0xe6   : > { %1045 = vst [vmem:[#allocation1 + $0x2] ss:$4 sm:$0xff] %v734_v23  ;;  %v663_v59 = vadd.f32 %v2969_v24, %v662_v0  ;;  %v1174_v8 = vsel %vm3098_vm15, %v1042_v51, 0.0  ;;  %v1206_v39 = vmul.f32 %v3031_v55, %v1173_v21  ;;  %2147 = vmatpush.bf16.msra.mxu1 %v2464_v11  ;;  %2494 = vmatpush.bf16.msrb.mxu3 %v2464_v11 }
  0xe7   : > { %1046 = vst [vmem:[#allocation1 + $0x3] ss:$4 sm:$0xff] %v790_v20  ;;  %v1499_v15 = vmul.f32 %v3044_v6, %v1174_v8  ;;  %v1546_v22 = vrot.slane %v1498_v52, 1  ;;  %v1620_v23 = vmul.f32 %v3053_v12, %v1174_v8  ;;  %v1667_v51 = vrot.slane %v1619_v31, 2 }
  0xe8   : > { %1047 = vst [vmem:[#allocation1 + $0x20] ss:$4 sm:$0xff] %v791_v43  ;;  %v712_v17 = vmax.f32 %v663_v59, 0.0  ;;  %v1225_v0 = vmul.f32 %v3002_v16, %v1174_v8  ;;  %v1275_v40 = vrot.slane %v1224_v63, 1  ;;  %v1481_v52 = vadd.f32 %v1465_v2, %v1448_v28 }
  0xe9   : > { %1048 = vst [vmem:[#allocation1 + $0x21] ss:$4 sm:$0xff] %v792_v44  ;;  %v1547_v49 = vsel %vm1268_vm10, %v1545_v33, %v1546_v22  ;;  %v1548_v46 = vrot.slane %v1499_v15, 1  ;;  %v1669_v43 = vrot.slane %v1620_v23, 2  ;;  %v1346_v63 = vmul.f32 %v3016_v42, %v1173_v21 }
  0xea   : > { %v3133_v31 = vmin.f32 %v712_v17, 6.0  ;;  %v1601_v59 = vadd.f32 %v1547_v49, %v1480_v7  ;;  %v1276_v44 = vsel %vm1268_vm10, %v1274_v37, %v1275_v40  ;;  %v1668_v28 = vsel %vm1390_vm12, %v1666_v36, %v1667_v51  ;;  %2148 = vmatpush.bf16.msra.mxu1 %v2463_v9  ;;  %2495 = vmatpush.bf16.msrb.mxu3 %v2463_v9 }
  0xeb   : > { %v1549_v45 = vsel %vm1268_vm10, %v1546_v22, %v1548_v46  ;;  %v1670_v33 = vsel %vm1390_vm12, %v1667_v51, %v1669_v43  ;;  %v1277_v2 = vrot.slane %v1225_v0, 1  ;;  %v1327_v36 = vadd.f32 %v1276_v44, %v1205_v34 }
  0xec   : > { %v793_v11 = vrot.slane %v3133_v31, 2  ;;  %v794_v15 = vrot.slane %v3133_v31, 4  ;;  %1049 = vst [vmem:[#allocation1 + $0x22] ss:$4 sm:$0xff] %v3133_v31  ;;  %v1602_v46 = vadd.f32 %v1549_v45, %v1481_v52  ;;  %v795_v37 = vrot.slane %v3133_v31, 6 }
  0xed   : > { %v672_v49 = vpop.f32.mrf.mxu2  ;;  %v664_v22 = vpop.f32.mrf.mxu0  ;;  %v1278_v23 = vsel %vm1268_vm10, %v1275_v40, %v1277_v2  ;;  %v1347_v17 = vmul.f32 %v3016_v42, %v1174_v8  ;;  %v1722_v43 = vadd.f32 %v1668_v28, %v1601_v59  ;;  %v1397_v30 = vrot.slane %v1346_v63, 2 }
  0xee   : > { %v673_v21 = vadd.f32 %v2969_v24, %v672_v49  ;;  %v1051_v51 = vld.sshfl [vmem:[#allocation1] sm:$0xff pattern:$0x73625140]  ;;  %1050 = vst [vmem:[#allocation1 + $0x23] ss:$4 sm:$0xff] %v793_v11  ;;  %v665_v0 = vadd.f32 %v2969_v24, %v664_v22  ;;  %v1723_v35 = vadd.f32 %v1670_v33, %v1602_v46  ;;  %v1328_v52 = vadd.f32 %v1278_v23, %v1206_v39 }
  0xef   : > { %1053 = vst [vmem:[#allocation1] ss:$4 sm:$0xff] %v794_v15  ;;  %v3161_v34 = vsel %vm3150_vm1, %v1051_v51, 0.0  ;;  %v1399_v31 = vrot.slane %v1347_v17, 2  ;;  %v4151_v39 = vrot.slane %v3082_v60, 2 }
  0xf0   : > { %v716_v45 = vmax.f32 %v673_v21, 0.0  ;;  %v713_v44 = vmax.f32 %v665_v0, 0.0  ;;  %v1739_v40 = vmul.f32 %v3076_v56, %v3161_v34  ;;  %v1772_v8 = vmul.f32 %v3085_v3, %v3161_v34 }
  0xf1   : > { %v3169_v59 = vmul.f32 %v3087_v4, %v3161_v34  ;;  %v1398_v9 = vsel %vm1390_vm12, %v4151_v39, %v1397_v30  ;;  %v1400_v28 = vsel %vm1390_vm12, %v1397_v30, %v1399_v31  ;;  %v1466_v33 = vmul.f32 %v3060_v25, %v3161_v34 }
  0xf2   : > { %v3173_v63 = vmin.f32 %v716_v45, 6.0  ;;  %v736_v2 = vmin.f32 %v713_v44, 6.0  ;;  %v1755_v11 = vadd.f32 %v1739_v40, %v1722_v43  ;;  %v1820_v15 = vrot.slane %v1772_v8, 1 }
  0xf3   : > { %v1941_v49 = vrot.slane %v3169_v59, 2  ;;  %v1449_v22 = vadd.f32 %v1398_v9, %v1327_v36  ;;  %v1450_v0 = vadd.f32 %v1400_v28, %v1328_v52  ;;  %v3198_v36 = vmul.f32 %v3044_v6, %v3161_v34 }
  0xf4   : > { %v796_v60 = vrot.slane %v736_v2, 2  ;;  %v797_v23 = vrot.slane %v736_v2, 4  ;;  %v798_v17 = vrot.slane %v736_v2, 6  ;;  %v3202_v40 = vmul.f32 %v3053_v12, %v3161_v34 }
  0xf5   : > { %v674_v51 = vpop.f32.mrf.mxu2  ;;  %v1052_v43 = vld.sshfl [vmem:[#allocation1 + $0x20] sm:$0xff pattern:$0x73625140]  ;;  %v667_v31 = vpop.f32.mrf.mxu0  ;;  %v3194_v44 = vadd.f32 %v1466_v33, %v1449_v22  ;;  %v3211_v39 = vmul.f32 %v3031_v55, %v3161_v34  ;;  %v3215_v9 = vmul.f32 %v3002_v16, %v3161_v34 }
  0xf6   : > { %v675_v45 = vadd.f32 %v2969_v24, %v674_v51  ;;  %v1054_v8 = vld.sshfl [vmem:[#allocation1] sm:$0xff pattern:$0x73625140]  ;;  %1055 = vst [vmem:[#allocation1 + $0x20] ss:$4 sm:$0xff] %v795_v37  ;;  %v668_v59 = vadd.f32 %v2969_v24, %v667_v31  ;;  %v3207_v52 = vsel %vm3128_vm0, %v1052_v43, 0.0 }
  0xf7   : > { %1056 = vst [vmem:[#allocation1 + $0x21] ss:$4 sm:$0xff] %v736_v2  ;;  %v3219_v33 = vsel %vm3189_vm6, %v1054_v8, 0.0  ;;  %v1740_v37 = vmul.f32 %v3076_v56, %v3207_v52  ;;  %v1773_v20 = vmul.f32 %v3085_v3, %v3207_v52  ;;  %v1894_v43 = vmul.f32 %v3087_v4, %v3207_v52 }
  0xf8   : > { %v717_v28 = vmax.f32 %v675_v45, 0.0  ;;  %1057 = vst [vmem:[#allocation1 + $0x22] ss:$4 sm:$0xff] %v796_v60  ;;  %v714_v22 = vmax.f32 %v668_v59, 0.0  ;;  %v1774_v51 = vmul.f32 %v3085_v3, %v3219_v33  ;;  %v1895_v2 = vmul.f32 %v3087_v4, %v3219_v33 }
  0xf9   : > { %1058 = vst [vmem:[#allocation1 + $0x23] ss:$4 sm:$0xff] %v797_v23  ;;  %v1756_v45 = vadd.f32 %v1740_v37, %v1723_v35  ;;  %v1821_v31 = vrot.slane %v1773_v20, 1  ;;  %v1467_v8 = vmul.f32 %v3060_v25, %v3207_v52  ;;  %v1942_v21 = vrot.slane %v1894_v43, 2 }
  0xfa   : > { %v3231_v30 = vmin.f32 %v717_v28, 6.0  ;;  %1060 = vst [vmem:[#allocation1] ss:$4 sm:$0xff] %v798_v17  ;;  %v737_v60 = vmin.f32 %v714_v22, 6.0  ;;  %v1823_v59 = vrot.slane %v1774_v51, 1  ;;  %v1944_v46 = vrot.slane %v1895_v2, 2 }
  0xfb   : > { %v1822_v23 = vsel %vm1268_vm10, %v1820_v15, %v1821_v31  ;;  %v1943_v19 = vsel %vm1390_vm12, %v1941_v49, %v1942_v21  ;;  %v1501_v49 = vmul.f32 %v3044_v6, %v3207_v52 }
  0xfc   : > { %v799_v17 = vrot.slane %v737_v60, 2  ;;  %v800_v28 = vrot.slane %v737_v60, 4  ;;  %v801_v37 = vrot.slane %v737_v60, 6  ;;  %1061 = vst [vmem:[#allocation1 + $0x1] ss:$4 sm:$0xff] %v737_v60  ;;  %v1824_v22 = vsel %vm1268_vm10, %v1821_v31, %v1823_v59 }
  0xfd   : > { %v677_v20 = vpop.f32.mrf.mxu2  ;;  %v669_v43 = vpop.f32.mrf.mxu0  ;;  %v1876_v2 = vadd.f32 %v1822_v23, %v1755_v11  ;;  %v1877_v15 = vadd.f32 %v1824_v22, %v1756_v45  ;;  %v1945_v60 = vsel %vm1390_vm12, %v1942_v21, %v1944_v46  ;;  %v1483_v11 = vadd.f32 %v1467_v8, %v1450_v0 }
  0xfe   : > { %v678_v51 = vadd.f32 %v2969_v24, %v677_v20  ;;  %1062 = vst [vmem:[#allocation1 + $0x2] ss:$4 sm:$0xff] %v799_v17  ;;  %v670_v27 = vadd.f32 %v2969_v24, %v669_v43  ;;  %v1502_v17 = vmul.f32 %v3044_v6, %v3219_v33  ;;  %v1550_v20 = vrot.slane %v3198_v36, 1 }
  0xff   : > { %1063 = vst [vmem:[#allocation1 + $0x3] ss:$4 sm:$0xff] %v800_v28  ;;  %v1997_v59 = vadd.f32 %v1943_v19, %v1876_v2  ;;  %v1998_v23 = vadd.f32 %v1945_v60, %v1877_v15  ;;  %v1551_v22 = vrot.slane %v1501_v49, 1  ;;  %v1622_v43 = vmul.f32 %v3053_v12, %v3207_v52 }
 0x100   : > { %v718_v45 = vmax.f32 %v678_v51, 0.0  ;;  %v1059_v46 = vld.sshfl [vmem:[#allocation1 + $0x20] sm:$0xff pattern:$0x73625140]  ;;  %v715_v21 = vmax.f32 %v670_v27, 0.0  ;;  %v1553_v2 = vrot.slane %v1502_v17, 1  ;;  %v1623_v36 = vmul.f32 %v3053_v12, %v3219_v33 }
 0x101   : > { %1064 = vst [vmem:[#allocation1 + $0x20] ss:$4 sm:$0xff] %v801_v37  ;;  %v2017_v8 = vadd.f32 %v3253_v48, %v1997_v59  ;;  %v2018_v28 = vadd.f32 %v3253_v48, %v1998_v23  ;;  %v3278_v19 = vsel %vm3261_vm8, %v1059_v46, 0.0  ;;  %v1552_v27 = vsel %vm1268_vm10, %v1550_v20, %v1551_v22 }
 0x102   : > { %v3272_v0 = vmin.f32 %v718_v45, 6.0  ;;  %v738_v51 = vmin.f32 %v715_v21, 6.0  ;;  %v1554_v17 = vsel %vm1268_vm10, %v1551_v22, %v1553_v2  ;;  %v1603_v20 = vadd.f32 %v1552_v27, %v3194_v44 }
 0x103   : > { %v2033_v49 = vmax.f32 %v2017_v8, 0.0  ;;  %v2034_v46 = vmax.f32 %v2018_v28, 0.0  ;;  %v1604_v60 = vadd.f32 %v1554_v17, %v1483_v11  ;;  %v1671_v28 = vrot.slane %v3202_v40, 2 }
 0x104   : > { %v811_v15 = vrot.slane %v3272_v0, 2  ;;  %v802_v45 = vrot.slane %v738_v51, 2  ;;  %v803_v59 = vrot.slane %v738_v51, 4  ;;  %v804_v23 = vrot.slane %v738_v51, 6 }
 0x105   : > { %v679_v31 = vpop.f32.mrf.mxu2  ;;  %v2049_v7 = vmin.f32 %v2033_v49, 6.0  ;;  %v2050_v14 = vmin.f32 %v2034_v46, 6.0  ;;  %v1672_v37 = vrot.slane %v1622_v43, 2  ;;  %v1674_v44 = vrot.slane %v1623_v36, 2 }
 0x106   : > { %v680_v21 = vadd.f32 %v2969_v24, %v679_v31  ;;  %v1065_v10 = vld.sshfl [vmem:[#allocation1] sm:$0xff pattern:$0x73625140]  ;;  %v1741_v27 = vmul.f32 %v3076_v56, %v3278_v19  ;;  %v1775_v40 = vmul.f32 %v3085_v3, %v3278_v19  ;;  %v4161_v17 = vrot.slane %v3173_v63, 4 }
 0x107   : > { %1067 = vst [vmem:[#allocation1] ss:$4 sm:$0xff] %v738_v51  ;;  %v3300_v22 = vsel %vm3243_vm7, %v1065_v10, 0.0  ;;  %v2065_v31 = vpack.c.bf16 %v2050_v14, %v2049_v7  ;;  %v1673_v46 = vsel %vm1390_vm12, %v1671_v28, %v1672_v37  ;;  %v1675_v43 = vsel %vm1390_vm12, %v1672_v37, %v1674_v44 }
 0x108   : > { %v719_v49 = vmax.f32 %v680_v21, 0.0  ;;  %v1066_v2 = vld.sshfl [vmem:[#allocation1 + $0x20] sm:$0xff pattern:$0x73625140]  ;;  %1068 = vst [vmem:[#allocation1 + $0x1] ss:$4 sm:$0xff] %v802_v45  ;;  %v1742_v11 = vmul.f32 %v3076_v56, %v3300_v22  ;;  %v1724_v51 = vadd.f32 %v1673_v46, %v1603_v20  ;;  %v1725_v7 = vadd.f32 %v1675_v43, %v1604_v60 }
 0x109   : > { %1071 = vst [vmem:[#allocation1 + $0x20] ss:$4 sm:$0xff] %v3173_v63  ;;  %v3314_v10 = vsel %vm3293_vm9, %v1066_v2, 0.0  ;;  %v4160_v14 = vrot.slane %v3173_v63, 2  ;;  %2149 = vmatmul.bf16.vlgmr.msra.gmra.mxu1 %v2065_v31  ;;  %v1776_v36 = vmul.f32 %v3085_v3, %v3300_v22  ;;  %v1825_v21 = vrot.slane %v1775_v40, 1 }
 0x10a   : > { %v3310_v35 = vmin.f32 %v719_v49, 6.0  ;;  %v1777_v45 = vmul.f32 %v3085_v3, %v3314_v10  ;;  %1073 = vst [vmem:[#allocation1 + $0x22] ss:$4 sm:$0xff] %v4161_v17  ;;  %v1757_v28 = vadd.f32 %v1741_v27, %v1724_v51  ;;  %v4162_v49 = vrot.slane %v3173_v63, 6 }
 0x10b   : > { %1072 = vst [vmem:[#allocation1 + $0x21] ss:$4 sm:$0xff] %v4160_v14  ;;  %v1758_v44 = vadd.f32 %v1742_v11, %v1725_v7  ;;  %v1826_v2 = vrot.slane %v1776_v36, 1  ;;  %v1896_v46 = vmul.f32 %v3087_v4, %v3278_v19  ;;  %v1897_v43 = vmul.f32 %v3087_v4, %v3300_v22 }
 0x10c   : > { %v814_v8 = vrot.slane %v3310_v35, 2  ;;  %1074 = vst [vmem:[#allocation1 + $0x23] ss:$4 sm:$0xff] %v4162_v49  ;;  %v1828_v31 = vrot.slane %v1777_v45, 1  ;;  %v1898_v14 = vmul.f32 %v3087_v4, %v3314_v10  ;;  %v846_v27 = vadd.s32 4, %v2974_v54 }
 0x10d   : > { %v682_v60 = vpop.f32.mrf.mxu2  ;;  %1069 = vst [vmem:[#allocation1 + $0x2] ss:$4 sm:$0xff] %v803_v59  ;;  %v1827_v63 = vsel %vm1268_vm10, %v1825_v21, %v1826_v2  ;;  %v1946_v51 = vrot.slane %v1896_v46, 2  ;;  %v1208_v7 = vmul.f32 %v3031_v55, %v3207_v52  ;;  %v1947_v17 = vrot.slane %v1897_v43, 2 }
 0x10e   : > { %v683_v40 = vadd.f32 %v2969_v24, %v682_v60  ;;  %1070 = vst [vmem:[#allocation1 + $0x3] ss:$4 sm:$0xff] %v804_v23  ;;  %v1829_v11 = vsel %vm1268_vm10, %v1826_v2, %v1828_v31  ;;  %v1878_v36 = vadd.f32 %v1827_v63, %v1757_v28  ;;  %v1949_v49 = vrot.slane %v1898_v14, 2 }
 0x10f   : > { %v1879_v45 = vadd.f32 %v1829_v11, %v1758_v44  ;;  %vm860_vm11 = vcmp.ge.s32.totalorder %v846_v27, 1  ;;  %vm870_vm13 = vcmp.le.s32.totalorder %v846_v27, 16  ;;  %v1227_v60 = vmul.f32 %v3002_v16, %v3207_v52 }
 0x110   : > { %v720_v59 = vmax.f32 %v683_v40, 0.0  ;;  %v1948_v23 = vsel %vm1390_vm12, %v1946_v51, %v1947_v17  ;;  %vm3347_vm14 = vmand %vm860_vm11, %vm870_vm13  ;;  %v1228_v2 = vmul.f32 %v3002_v16, %v3219_v33  ;;  %v1279_v28 = vrot.slane %v3215_v9, 1 }
 0x111   : > { %v1950_v44 = vsel %vm1390_vm12, %v1947_v17, %v1949_v49  ;;  %v1999_v31 = vadd.f32 %v1948_v23, %v1878_v36  ;;  %v1280_v46 = vrot.slane %v1227_v60, 1  ;;  %v1348_v40 = vmul.f32 %v3016_v42, %v3161_v34  ;;  %vm3364_vm15 = vmand %vm3347_vm14, %vm886_vm3 }
 0x112   : > { %v3344_v20 = vmin.f32 %v720_v59, 6.0  ;;  %v2000_v63 = vadd.f32 %v1950_v44, %v1879_v45  ;;  %v1282_v17 = vrot.slane %v1228_v2, 1  ;;  %v4167_v45 = vrot.slane %v3231_v30, 2  ;;  %vm936_vm0 = vmand %vm3347_vm14, %vm921_vm5 }
 0x113   : > { %v1076_v11 = vld.sshfl [vmem:[#allocation1 + $0x20] sm:$0xff pattern:$0x73625140]  ;;  %v2019_v59 = vadd.f32 %v3253_v48, %v1999_v31  ;;  %v1281_v36 = vsel %vm1268_vm10, %v1279_v28, %v1280_v46  ;;  %v1349_v31 = vmul.f32 %v3016_v42, %v3207_v52  ;;  %v4168_v27 = vrot.slane %v3231_v30, 4 }
 0x114   : > { %v3371_v34 = vsel %vm3347_vm14, %v1076_v11, 0.0  ;;  %1079 = vst [vmem:[#allocation1 + $0x20] ss:$4 sm:$0xff] %v4167_v45  ;;  %v2020_v60 = vadd.f32 %v3253_v48, %v2000_v63  ;;  %v1329_v44 = vadd.f32 %v1281_v36, %v3211_v39  ;;  %v1283_v28 = vsel %vm1268_vm10, %v1280_v46, %v1282_v17 }
 0x115   : > { %v684_v51 = vpop.f32.mrf.mxu2  ;;  %v1075_v23 = vld.sshfl [vmem:[#allocation1] sm:$0xff pattern:$0x73625140]  ;;  %1080 = vst [vmem:[#allocation1 + $0x21] ss:$4 sm:$0xff] %v4168_v27  ;;  %v2035_v11 = vmax.f32 %v2019_v59, 0.0  ;;  %v1350_v63 = vmul.f32 %v3016_v42, %v3219_v33  ;;  %v1330_v36 = vadd.f32 %v1283_v28, %v1208_v7  ;;  %v1468_v9 = vmul.f32 %v3060_v25, %v3278_v19 }
 0x116   : > { %v685_v49 = vadd.f32 %v2969_v24, %v684_v51  ;;  %1077 = vst [vmem:[#allocation1] ss:$4 sm:$0xff] %v3231_v30  ;;  %v3386_v2 = vsel %vm3364_vm15, %v1075_v23, 0.0  ;;  %v2036_v39 = vmax.f32 %v2020_v60, 0.0  ;;  %v1401_v45 = vrot.slane %v1348_v40, 2 }
 0x117   : > { %v4169_v52 = vrot.slane %v3231_v30, 6  ;;  %v2051_v27 = vmin.f32 %v2035_v11, 6.0  ;;  %v1402_v59 = vrot.slane %v1349_v31, 2  ;;  %v1404_v14 = vrot.slane %v1350_v63, 2  ;;  %1082 = vst [vmem:[#allocation1 + $0x23] ss:$4 sm:$0xff] %v3272_v0 }
 0x118   : > { %v721_v51 = vmax.f32 %v685_v49, 0.0  ;;  %v2052_v46 = vmin.f32 %v2036_v39, 6.0  ;;  %v1469_v33 = vmul.f32 %v3060_v25, %v3300_v22  ;;  %v1503_v7 = vmul.f32 %v3044_v6, %v3278_v19 }
 0x119   : > { %1081 = vst [vmem:[#allocation1 + $0x22] ss:$4 sm:$0xff] %v4169_v52  ;;  %v1403_v30 = vsel %vm1390_vm12, %v1401_v45, %v1402_v59  ;;  %v1405_v40 = vsel %vm1390_vm12, %v1402_v59, %v1404_v14  ;;  %v1504_v17 = vmul.f32 %v3044_v6, %v3300_v22  ;;  %v1505_v49 = vmul.f32 %v3044_v6, %v3314_v10 }
 0x11a   : > { %v3396_v23 = vmin.f32 %v721_v51, 6.0  ;;  %v2066_v28 = vpack.c.bf16 %v2052_v46, %v2051_v27  ;;  %v1451_v14 = vadd.f32 %v1403_v30, %v1329_v44  ;;  %v1452_v51 = vadd.f32 %v1405_v40, %v1330_v36 }
 0x11b   : > { %v1555_v39 = vrot.slane %v1503_v7, 1  ;;  %v1556_v45 = vrot.slane %v1504_v17, 1  ;;  %v1558_v60 = vrot.slane %v1505_v49, 1  ;;  %v1624_v31 = vmul.f32 %v3053_v12, %v3278_v19 }
 0x11c   : > { %2154 = vmatmul.bf16.gmra.mxu1 %v2066_v28  ;;  %v1625_v27 = vmul.f32 %v3053_v12, %v3300_v22  ;;  %v1484_v21 = vadd.f32 %v1468_v9, %v1451_v14  ;;  %v1485_v11 = vadd.f32 %v1469_v33, %v1452_v51  ;;  %v1626_v30 = vmul.f32 %v3053_v12, %v3314_v10 }
 0x11d   : > { %v687_v63 = vpop.f32.mrf.mxu2  ;;  %v1078_v59 = vld.sshfl [vmem:[#allocation1] sm:$0xff pattern:$0x73625140]  ;;  %v1557_v44 = vsel %vm1268_vm10, %v1555_v39, %v1556_v45  ;;  %v1559_v7 = vsel %vm1268_vm10, %v1556_v45, %v1558_v60  ;;  %v1676_v40 = vrot.slane %v1624_v31, 2  ;;  %v4170_v17 = vrot.slane %v3272_v0, 4 }
 0x11e   : > { %v688_v52 = vadd.f32 %v2969_v24, %v687_v63  ;;  %v3420_v46 = vsel %vm936_vm0, %v1078_v59, 0.0  ;;  %1084 = vst [vmem:[#allocation1] ss:$4 sm:$0xff] %v811_v15  ;;  %v1605_v49 = vadd.f32 %v1557_v44, %v1484_v21  ;;  %v1606_v28 = vadd.f32 %v1559_v7, %v1485_v11 }
 0x11f   : > { %1085 = vst [vmem:[#allocation1 + $0x1] ss:$4 sm:$0xff] %v4170_v17  ;;  %v1677_v63 = vrot.slane %v1625_v27, 2  ;;  %v1743_v9 = vmul.f32 %v3076_v56, %v3386_v2  ;;  %v4171_v33 = vrot.slane %v3272_v0, 6  ;;  %v1679_v60 = vrot.slane %v1626_v30, 2 }
 0x120   : > { %v722_v36 = vmax.f32 %v688_v52, 0.0  ;;  %v3434_v15 = vld.sshfl [vmem:[#allocation1 + $0x20] sm:$0xff pattern:$0x73625140]  ;;  %v1744_v31 = vmul.f32 %v3076_v56, %v3371_v34  ;;  %v1778_v51 = vmul.f32 %v3085_v3, %v3386_v2  ;;  %1087 = vst [vmem:[#allocation1 + $0x3] ss:$4 sm:$0xff] %v3310_v35  ;;  %v1779_v39 = vmul.f32 %v3085_v3, %v3371_v34 }
 0x121   : > { %1086 = vst [vmem:[#allocation1 + $0x2] ss:$4 sm:$0xff] %v4171_v33  ;;  %v1678_v11 = vsel %vm1390_vm12, %v1676_v40, %v1677_v63  ;;  %v1780_v0 = vmul.f32 %v3085_v3, %v3420_v46  ;;  %v1899_v45 = vmul.f32 %v3087_v4, %v3386_v2  ;;  %v1680_v21 = vsel %vm1390_vm12, %v1677_v63, %v1679_v60 }
 0x122   : > { %v3436_v14 = vmin.f32 %v722_v36, 6.0  ;;  %1088 = vst [vmem:[#allocation1 + $0x20] ss:$4 sm:$0xff] %v814_v8  ;;  %v1726_v7 = vadd.f32 %v1678_v11, %v1605_v49  ;;  %v1727_v30 = vadd.f32 %v1680_v21, %v1606_v28  ;;  %v1830_v40 = vrot.slane %v1778_v51, 1 }
 0x123   : > { %v1831_v17 = vrot.slane %v1779_v39, 1  ;;  %v1833_v43 = vrot.slane %v1780_v0, 1  ;;  %v1900_v8 = vmul.f32 %v3087_v4, %v3371_v34  ;;  %v1901_v52 = vmul.f32 %v3087_v4, %v3420_v46 }
 0x124   : > { %v697_v44 = vpop.f32.mrf.mxu3  ;;  %v1759_v59 = vadd.f32 %v1743_v9, %v1726_v7  ;;  %v1760_v37 = vadd.f32 %v1744_v31, %v1727_v30  ;;  %v1951_v63 = vrot.slane %v1899_v45, 2  ;;  %v847_v21 = vadd.s32 5, %v2974_v54 }
 0x125   : > { %v689_v36 = vpop.f32.mrf.mxu2  ;;  %v1832_v27 = vsel %vm1268_vm10, %v1830_v40, %v1831_v17  ;;  %v1834_v49 = vsel %vm1268_vm10, %v1831_v17, %v1833_v43  ;;  %v1952_v28 = vrot.slane %v1900_v8, 2  ;;  %v1954_v51 = vrot.slane %v1901_v52, 2 }
 0x126   : > { %v690_v33 = vadd.f32 %v2969_v24, %v689_v36  ;;  %v1880_v11 = vadd.f32 %v1832_v27, %v1759_v59  ;;  %v1881_v39 = vadd.f32 %v1834_v49, %v1760_v37  ;;  %v698_v0 = vadd.f32 %v2969_v24, %v697_v44 }
 0x127   : > { %v1953_v9 = vsel %vm1390_vm12, %v1951_v63, %v1952_v28  ;;  %v1955_v31 = vsel %vm1390_vm12, %v1952_v28, %v1954_v51  ;;  %v3471_v45 = vmul.f32 %v3031_v55, %v3278_v19  ;;  %v4172_v43 = vrot.slane %v3310_v35, 4 }
 0x128   : > { %v723_v60 = vmax.f32 %v690_v33, 0.0  ;;  %v1089_v36 = vld.sshfl [vmem:[#allocation1] sm:$0xff pattern:$0x73625140]  ;;  %v2001_v37 = vadd.f32 %v1953_v9, %v1880_v11  ;;  %v2002_v52 = vadd.f32 %v1955_v31, %v1881_v39  ;;  %v726_v24 = vmax.f32 %v698_v0, 0.0 }
 0x129   : > { %v1090_v7 = vld.sshfl [vmem:[#allocation1 + $0x20] sm:$0xff pattern:$0x73625140]  ;;  %1091 = vst [vmem:[#allocation1] ss:$4 sm:$0xff] %v4172_v43  ;;  %vm861_vm1 = vcmp.ge.s32.totalorder %v847_v21, 1  ;;  %v1210_v11 = vmul.f32 %v3031_v55, %v3300_v22  ;;  %v1229_v39 = vmul.f32 %v3002_v16, %v3278_v19  ;;  %v1628_v44 = vmul.f32 %v3053_v12, %v3371_v34 }
 0x12a   : > { %v3465_v5 = vmin.f32 %v723_v60, 6.0  ;;  %v4173_v59 = vrot.slane %v3310_v35, 6  ;;  %vm871_vm2 = vcmp.le.s32.totalorder %v847_v21, 16  ;;  %1093 = vst [vmem:[#allocation1 + $0x2] ss:$4 sm:$0xff] %v3344_v20  ;;  %v2021_v33 = vadd.f32 %v3253_v48, %v2001_v37 }
 0x12b   : > { %v2022_v8 = vadd.f32 %v3253_v48, %v2002_v52  ;;  %v3483_v63 = vmin.f32 %v726_v24, 6.0  ;;  %v3488_v35 = vld [vmem:[%s4103_s2] ss:$0 sm:$0xff]  ;;  %vm881_vm4 = vmand %vm861_vm1, %vm871_vm2  ;;  %v4174_v49 = vrot.slane %v3344_v20, 2  ;;  %v4175_v0 = vrot.slane %v3344_v20, 4 }
 0x12c   : > { %1092 = vst [vmem:[#allocation1 + $0x1] ss:$4 sm:$0xff] %v4173_v59  ;;  %v699_v40 = vpop.f32.mrf.mxu3  ;;  %vm904_vm6 = vmand %vm881_vm4, %vm886_vm3  ;;  %v3496_v51 = vsel %vm881_vm4, %v1089_v36, 0.0  ;;  %v2037_v21 = vmax.f32 %v2021_v33, 0.0  ;;  %v4176_v36 = vrot.slane %v3344_v20, 6  ;;  %v4180_v27 = vrot.slane %v3436_v14, 2 }
 0x12d   : > { %v692_v17 = vpop.f32.mrf.mxu2  ;;  %v700_v60 = vadd.f32 %v3488_v35, %v699_v40  ;;  %1094 = vst [vmem:[#allocation1 + $0x3] ss:$4 sm:$0xff] %v4174_v49  ;;  %v2038_v9 = vmax.f32 %v2022_v8, 0.0  ;;  %vm939_vm7 = vmand %vm881_vm4, %vm921_vm5  ;;  %v3512_v59 = vsel %vm904_vm6, %v3434_v15, 0.0  ;;  %v1230_v8 = vmul.f32 %v3002_v16, %v3300_v22 }
 0x12e   : > { %v693_v28 = vadd.f32 %v3488_v35, %v692_v17  ;;  %1095 = vst [vmem:[#allocation1 + $0x20] ss:$4 sm:$0xff] %v4175_v0  ;;  %v2053_v40 = vmin.f32 %v2037_v21, 6.0  ;;  %v3515_v33 = vsel %vm939_vm7, %v1090_v7, 0.0  ;;  %v4177_v49 = vrot.slane %v3396_v23, 2 }
 0x12f   : > { %1096 = vst [vmem:[#allocation1 + $0x21] ss:$4 sm:$0xff] %v4176_v36  ;;  %v727_v24 = vmax.f32 %v700_v60, 0.0  ;;  %v2054_v17 = vmin.f32 %v2038_v9, 6.0  ;;  %v1231_v15 = vmul.f32 %v3002_v16, %v3314_v10  ;;  %v1284_v60 = vrot.slane %v1229_v39, 1 }
 0x130   : > { %v724_v37 = vmax.f32 %v693_v28, 0.0  ;;  %1097 = vst [vmem:[#allocation1 + $0x22] ss:$4 sm:$0xff] %v3396_v23  ;;  %v1285_v36 = vrot.slane %v1230_v8, 1  ;;  %v1351_v7 = vmul.f32 %v3016_v42, %v3278_v19  ;;  %v1352_v21 = vmul.f32 %v3016_v42, %v3300_v22 }
 0x131   : > { %1098 = vst [vmem:[#allocation1 + $0x23] ss:$4 sm:$0xff] %v4177_v49  ;;  %v3523_v28 = vmin.f32 %v727_v24, 6.0  ;;  %v2067_v0 = vpack.c.bf16 %v2054_v17, %v2053_v40  ;;  %v1287_v8 = vrot.slane %v1231_v15, 1  ;;  %v1353_v24 = vmul.f32 %v3016_v42, %v3314_v10 }
 0x132   : > { %v3521_v20 = vmin.f32 %v724_v37, 6.0  ;;  %v1286_v19 = vsel %vm1268_vm10, %v1284_v60, %v1285_v36  ;;  %v1406_v37 = vrot.slane %v1351_v7, 2  ;;  %v1407_v49 = vrot.slane %v1352_v21, 2 }
 0x133   : > { %2159 = vmatmul.bf16.gmra.mxu1 %v2067_v0  ;;  %v1331_v31 = vadd.f32 %v1286_v19, %v3471_v45  ;;  %v4178_v0 = vrot.slane %v3396_v23, 4  ;;  %v1288_v40 = vsel %vm1268_vm10, %v1285_v36, %v1287_v8  ;;  %v1470_v60 = vmul.f32 %v3060_v25, %v3386_v2 }
 0x134   : > { %v3535_v52 = vpop.f32.mrf.mxu3  ;;  %v3540_v22 = vld.sshfl [vmem:[#allocation1] sm:$0xff pattern:$0x73625140]  ;;  %v1471_v15 = vmul.f32 %v3060_v25, %v3371_v34  ;;  %v1409_v9 = vrot.slane %v1353_v24, 2  ;;  %v1506_v45 = vmul.f32 %v3044_v6, %v3386_v2  ;;  %v1408_v7 = vsel %vm1390_vm12, %v1406_v37, %v1407_v49 }
 0x135   : > { %v694_v39 = vpop.f32.mrf.mxu2  ;;  %1101 = vst [vmem:[#allocation1] ss:$4 sm:$0xff] %v4178_v0  ;;  %v1507_v36 = vmul.f32 %v3044_v6, %v3371_v34  ;;  %v1508_v21 = vmul.f32 %v3044_v6, %v3420_v46  ;;  %v1627_v19 = vmul.f32 %v3053_v12, %v3386_v2 }
 0x136   : > { %v695_v43 = vadd.f32 %v3488_v35, %v694_v39  ;;  %v1332_v39 = vadd.f32 %v1288_v40, %v1210_v11  ;;  %v1410_v24 = vsel %vm1390_vm12, %v1407_v49, %v1409_v9  ;;  %v1453_v40 = vadd.f32 %v1408_v7, %v1331_v31 }
 0x137   : > { %v1560_v8 = vrot.slane %v1506_v45, 1  ;;  %v1561_v0 = vrot.slane %v1507_v36, 1  ;;  %v1563_v30 = vrot.slane %v1508_v21, 1  ;;  %v4181_v49 = vrot.slane %v3436_v14, 4 }
 0x138   : > { %v725_v17 = vmax.f32 %v695_v43, 0.0  ;;  %v3555_v10 = vld.sshfl [vmem:[#allocation1 + $0x20] sm:$0xff pattern:$0x73625140]  ;;  %v4179_v43 = vrot.slane %v3396_v23, 6  ;;  %v1454_v37 = vadd.f32 %v1410_v24, %v1332_v39  ;;  %v1486_v9 = vadd.f32 %v1470_v60, %v1453_v40 }
 0x139   : > { %1104 = vst [vmem:[#allocation1 + $0x21] ss:$4 sm:$0xff] %v3436_v14  ;;  %v1562_v45 = vsel %vm1268_vm10, %v1560_v8, %v1561_v0  ;;  %v1564_v7 = vsel %vm1268_vm10, %v1561_v0, %v1563_v30  ;;  %v1629_v36 = vmul.f32 %v3053_v12, %v3420_v46  ;;  %v1681_v24 = vrot.slane %v1627_v19, 2 }
 0x13a   : > { %1103 = vst [vmem:[#allocation1 + $0x20] ss:$4 sm:$0xff] %v4179_v43  ;;  %v3566_v11 = vmin.f32 %v725_v17, 6.0  ;;  %v1487_v39 = vadd.f32 %v1471_v15, %v1454_v37  ;;  %v1607_v21 = vadd.f32 %v1562_v45, %v1486_v9  ;;  %v1682_v17 = vrot.slane %v1628_v44, 2 }
 0x13b   : > { %1105 = vst [vmem:[#allocation1 + $0x22] ss:$4 sm:$0xff] %v4180_v27  ;;  %v1745_v60 = vmul.f32 %v3076_v56, %v3512_v59  ;;  %v4182_v40 = vrot.slane %v3436_v14, 6  ;;  %v1684_v15 = vrot.slane %v1629_v36, 2  ;;  %v1746_v8 = vmul.f32 %v3076_v56, %v3496_v51 }
 0x13c   : > { %v704_v31 = vpop.f32.mrf.mxu3  ;;  %1106 = vst [vmem:[#allocation1 + $0x23] ss:$4 sm:$0xff] %v4181_v49  ;;  %v3583_v27 = vld.sshfl [vmem:[#allocation1] sm:$0xff pattern:$0x73625140]  ;;  %v1781_v30 = vmul.f32 %v3085_v3, %v3512_v59  ;;  %v1683_v37 = vsel %vm1390_vm12, %v1681_v24, %v1682_v17  ;;  %v1782_v44 = vmul.f32 %v3085_v3, %v3496_v51  ;;  %v1783_v19 = vmul.f32 %v3085_v3, %v3515_v33 }
 0x13d   : > { %1108 = vst [vmem:[#allocation1] ss:$4 sm:$0xff] %v4182_v40  ;;  %v1608_v31 = vadd.f32 %v1564_v7, %v1487_v39  ;;  %v1902_v14 = vmul.f32 %v3087_v4, %v3512_v59  ;;  %v4183_v0 = vrot.slane %v3465_v5, 2  ;;  %v1685_v9 = vsel %vm1390_vm12, %v1682_v17, %v1684_v15 }
 0x13e   : > { %1109 = vst [vmem:[#allocation1 + $0x1] ss:$4 sm:$0xff] %v3465_v5  ;;  %v1728_v49 = vadd.f32 %v1683_v37, %v1607_v21  ;;  %v1835_v39 = vrot.slane %v1781_v30, 1  ;;  %v1903_v45 = vmul.f32 %v3087_v4, %v3496_v51  ;;  %v4184_v7 = vrot.slane %v3465_v5, 4 }
 0x13f   : > { %1110 = vst [vmem:[#allocation1 + $0x2] ss:$4 sm:$0xff] %v4183_v0  ;;  %v1729_v36 = vadd.f32 %v1685_v9, %v1608_v31  ;;  %v1836_v24 = vrot.slane %v1782_v44, 1  ;;  %v1838_v40 = vrot.slane %v1783_v19, 1  ;;  %v1904_v43 = vmul.f32 %v3087_v4, %v3515_v33 }
 0x140   : > { %1111 = vst [vmem:[#allocation1 + $0x3] ss:$4 sm:$0xff] %v4184_v7  ;;  %v1761_v23 = vadd.f32 %v1745_v60, %v1728_v49  ;;  %v1956_v62 = vrot.slane %v1902_v14, 2  ;;  %v1957_v1 = vrot.slane %v1903_v45, 2  ;;  %v703_v17 = vadd.f32 %v3488_v35, %v3535_v52 }
 0x141   : > { %v1762_v21 = vadd.f32 %v1746_v8, %v1729_v36  ;;  %v1837_v15 = vsel %vm1268_vm10, %v1835_v39, %v1836_v24  ;;  %v1839_v30 = vsel %vm1268_vm10, %v1836_v24, %v1838_v40  ;;  %v1959_v37 = vrot.slane %v1904_v43, 2 }
 0x142   : > { %v1882_v0 = vadd.f32 %v1837_v15, %v1761_v23  ;;  %v1958_v31 = vsel %vm1390_vm12, %v1956_v62, %v1957_v1  ;;  %v728_v44 = vmax.f32 %v703_v17, 0.0  ;;  %v848_v19 = vadd.s32 6, %v2974_v54 }
 0x143   : > { %v1883_v9 = vadd.f32 %v1839_v30, %v1762_v21  ;;  %v1960_v60 = vsel %vm1390_vm12, %v1957_v1, %v1959_v37  ;;  %v1211_v14 = vmul.f32 %v3031_v55, %v3386_v2  ;;  %v1212_v35 = vmul.f32 %v3031_v55, %v3371_v34  ;;  %v3623_v23 = vld.sshfl [vmem:[#allocation1 + $0x20] sm:$0xff pattern:$0x73625140] }
 0x144   : > { %v2003_v52 = vadd.f32 %v1958_v31, %v1882_v0  ;;  %v3621_v8 = vmin.f32 %v728_v44, 6.0  ;;  %vm862_vm8 = vcmp.ge.s32.totalorder %v848_v19, 1  ;;  %vm872_vm9 = vcmp.le.s32.totalorder %v848_v19, 16 }
 0x145   : > { %v2004_v62 = vadd.f32 %v1960_v60, %v1883_v9  ;;  %vm882_vm11 = vmand %vm862_vm8, %vm872_vm9  ;;  %v1232_v43 = vmul.f32 %v3002_v16, %v3386_v2  ;;  %v1233_v1 = vmul.f32 %v3002_v16, %v3371_v34  ;;  %v1234_v49 = vmul.f32 %v3002_v16, %v3420_v46 }
 0x146   : > { %v4185_v39 = vrot.slane %v3465_v5, 6  ;;  %v2023_v7 = vadd.f32 %v3253_v48, %v2003_v52  ;;  %v841_v36 = vrot.slane %v3621_v8, 2  ;;  %vm907_vm13 = vmand %vm882_vm11, %vm886_vm3  ;;  %v3640_v24 = vsel %vm882_vm11, %v3555_v10, 0.0 }
 0x147   : > { %v3633_v45 = vld.sshfl [vmem:[#allocation1] sm:$0xff pattern:$0x73625140]  ;;  %v1354_v40 = vmul.f32 %v3016_v42, %v3386_v2  ;;  %v2024_v5 = vadd.f32 %v3253_v48, %v2004_v62  ;;  %vm942_vm14 = vmand %vm882_vm11, %vm921_vm5  ;;  %v3649_v17 = vsel %vm907_vm13, %v3540_v22, 0.0  ;;  %v1289_v21 = vrot.slane %v1232_v43, 1 }
 0x148   : > { %1112 = vst [vmem:[#allocation1 + $0x20] ss:$4 sm:$0xff] %v4185_v39  ;;  %v1290_v15 = vrot.slane %v1233_v1, 1  ;;  %v4186_v30 = vrot.slane %v3521_v20, 2  ;;  %v2039_v10 = vmax.f32 %v2023_v7, 0.0  ;;  %v3654_v37 = vsel %vm942_vm14, %v3583_v27, 0.0 }
 0x149   : > { %1115 = vst [vmem:[#allocation1] ss:$4 sm:$0xff] %v3521_v20  ;;  %v1292_v2 = vrot.slane %v1234_v49, 1  ;;  %v1355_v0 = vmul.f32 %v3016_v42, %v3371_v34  ;;  %v4187_v31 = vrot.slane %v3521_v20, 4  ;;  %v2040_v44 = vmax.f32 %v2024_v5, 0.0 }
 0x14a   : > { %1116 = vst [vmem:[#allocation1 + $0x1] ss:$4 sm:$0xff] %v4186_v30  ;;  %v1291_v22 = vsel %vm1268_vm10, %v1289_v21, %v1290_v15  ;;  %v1356_v19 = vmul.f32 %v3016_v42, %v3420_v46  ;;  %v1411_v9 = vrot.slane %v1354_v40, 2  ;;  %v4188_v60 = vrot.slane %v3521_v20, 6 }
 0x14b   : > { %1117 = vst [vmem:[#allocation1 + $0x2] ss:$4 sm:$0xff] %v4187_v31  ;;  %v2055_v52 = vmin.f32 %v2039_v10, 6.0  ;;  %v1293_v27 = vsel %vm1268_vm10, %v1290_v15, %v1292_v2  ;;  %v1333_v62 = vadd.f32 %v1291_v22, %v1211_v14  ;;  %v1412_v43 = vrot.slane %v1355_v0, 2 }
 0x14c   : > { %1118 = vst [vmem:[#allocation1 + $0x3] ss:$4 sm:$0xff] %v4188_v60  ;;  %v2056_v1 = vmin.f32 %v2040_v44, 6.0  ;;  %v1334_v34 = vadd.f32 %v1293_v27, %v1212_v35  ;;  %v1414_v49 = vrot.slane %v1356_v19, 2  ;;  %v1472_v39 = vmul.f32 %v3060_v25, %v3512_v59 }
 0x14d   : > { %v1413_v7 = vsel %vm1390_vm12, %v1411_v9, %v1412_v43  ;;  %v1473_v46 = vmul.f32 %v3060_v25, %v3496_v51  ;;  %v1509_v20 = vmul.f32 %v3044_v6, %v3512_v59  ;;  %v1510_v40 = vmul.f32 %v3044_v6, %v3496_v51 }
 0x14e   : > { %v2068_v14 = vpack.c.bf16 %v2056_v1, %v2055_v52  ;;  %v1415_v35 = vsel %vm1390_vm12, %v1412_v43, %v1414_v49  ;;  %v1455_v21 = vadd.f32 %v1413_v7, %v1333_v62  ;;  %v1511_v15 = vmul.f32 %v3044_v6, %v3515_v33 }
 0x14f   : > { %v3675_v5 = vld.sshfl [vmem:[#allocation1 + $0x20] sm:$0xff pattern:$0x73625140]  ;;  %v1456_v30 = vadd.f32 %v1415_v35, %v1334_v34  ;;  %v1565_v10 = vrot.slane %v1509_v20, 1  ;;  %v1566_v2 = vrot.slane %v1510_v40, 1  ;;  %v1630_v0 = vmul.f32 %v3053_v12, %v3512_v59 }
 0x150   : > { %1119 = vst [vmem:[#allocation1 + $0x20] ss:$4 sm:$0xff] %v3566_v11  ;;  %v4189_v31 = vrot.slane %v3566_v11, 2  ;;  %2164 = vmatmul.bf16.gmra.mxu1 %v2068_v14  ;;  %v1488_v44 = vadd.f32 %v1472_v39, %v1455_v21  ;;  %v1568_v22 = vrot.slane %v1511_v15, 1  ;;  %v1631_v19 = vmul.f32 %v3053_v12, %v3496_v51 }
 0x151   : > { %v1632_v9 = vmul.f32 %v3053_v12, %v3515_v33  ;;  %v4190_v60 = vrot.slane %v3566_v11, 4  ;;  %v1489_v52 = vadd.f32 %v1473_v46, %v1456_v30  ;;  %v1567_v27 = vsel %vm1268_vm10, %v1565_v10, %v1566_v2 }
 0x152   : > { %1120 = vst [vmem:[#allocation1 + $0x21] ss:$4 sm:$0xff] %v4189_v31  ;;  %v1686_v62 = vrot.slane %v1630_v0, 2  ;;  %v1747_v43 = vmul.f32 %v3076_v56, %v3649_v17  ;;  %v4191_v1 = vrot.slane %v3566_v11, 6  ;;  %v1569_v34 = vsel %vm1268_vm10, %v1566_v2, %v1568_v22 }
 0x153   : > { %1121 = vst [vmem:[#allocation1 + $0x22] ss:$4 sm:$0xff] %v4190_v60  ;;  %v1609_v49 = vadd.f32 %v1567_v27, %v1488_v44  ;;  %v1687_v39 = vrot.slane %v1631_v19, 2  ;;  %v1689_v7 = vrot.slane %v1632_v9, 2  ;;  %v1610_v20 = vadd.f32 %v1569_v34, %v1489_v52 }
 0x154   : > { %1122 = vst [vmem:[#allocation1 + $0x23] ss:$4 sm:$0xff] %v4191_v1  ;;  %v1748_v40 = vmul.f32 %v3076_v56, %v3640_v24  ;;  %v1784_v46 = vmul.f32 %v3085_v3, %v3649_v17  ;;  %v1785_v14 = vmul.f32 %v3085_v3, %v3640_v24  ;;  %v1786_v21 = vmul.f32 %v3085_v3, %v3654_v37 }
 0x155   : > { %v1688_v35 = vsel %vm1390_vm12, %v1686_v62, %v1687_v39  ;;  %v1690_v11 = vsel %vm1390_vm12, %v1687_v39, %v1689_v7  ;;  %v1905_v15 = vmul.f32 %v3087_v4, %v3649_v17  ;;  %v1906_v44 = vmul.f32 %v3087_v4, %v3640_v24 }
 0x156   : > { %v1730_v30 = vadd.f32 %v1688_v35, %v1609_v49  ;;  %v1731_v10 = vadd.f32 %v1690_v11, %v1610_v20  ;;  %v1840_v2 = vrot.slane %v1784_v46, 1  ;;  %v1841_v0 = vrot.slane %v1785_v14, 1  ;;  %v3724_v14 = vld.sshfl [vmem:[#allocation1] sm:$0xff pattern:$0x73625140] }
 0x157   : > { %v1843_v31 = vrot.slane %v1786_v21, 1  ;;  %v1907_v22 = vmul.f32 %v3087_v4, %v3654_v37  ;;  %v1961_v19 = vrot.slane %v1905_v15, 2  ;;  %v849_v27 = vadd.s32 7, %v2974_v54  ;;  %1125 = vst [vmem:[#allocation1] ss:$4 sm:$0xff] %v3483_v63 }
 0x158   : > { %v1763_v9 = vadd.f32 %v1747_v43, %v1730_v30  ;;  %v1764_v60 = vadd.f32 %v1748_v40, %v1731_v10  ;;  %v1842_v52 = vsel %vm1268_vm10, %v1840_v2, %v1841_v0  ;;  %v1962_v1 = vrot.slane %v1906_v44, 2 }
 0x159   : > { %v1844_v62 = vsel %vm1268_vm10, %v1841_v0, %v1843_v31  ;;  %v1964_v34 = vrot.slane %v1907_v22, 2  ;;  %v1213_v49 = vmul.f32 %v3031_v55, %v3512_v59  ;;  %vm863_vm15 = vcmp.ge.s32.totalorder %v849_v27, 1 }
 0x15a   : > { %v1884_v39 = vadd.f32 %v1842_v52, %v1763_v9  ;;  %v1885_v7 = vadd.f32 %v1844_v62, %v1764_v60  ;;  %vm873_vm0 = vcmp.le.s32.totalorder %v849_v27, 16  ;;  %v1963_v20 = vsel %vm1390_vm12, %v1961_v19, %v1962_v1 }
 0x15b   : > { %v1965_v43 = vsel %vm1390_vm12, %v1962_v1, %v1964_v34  ;;  %vm883_vm1 = vmand %vm863_vm15, %vm873_vm0  ;;  %v1214_v40 = vmul.f32 %v3031_v55, %v3496_v51  ;;  %v1235_v46 = vmul.f32 %v3002_v16, %v3512_v59  ;;  %v3726_v35 = vld.sshfl [vmem:[#allocation1 + $0x20] sm:$0xff pattern:$0x73625140]  ;;  %v1236_v30 = vmul.f32 %v3002_v16, %v3496_v51 }
 0x15c   : > { %v2005_v11 = vadd.f32 %v1963_v20, %v1884_v39  ;;  %v2006_v21 = vadd.f32 %v1965_v43, %v1885_v7  ;;  %vm910_vm2 = vmand %vm883_vm1, %vm886_vm3  ;;  %v3731_v15 = vsel %vm883_vm1, %v3633_v45, 0.0  ;;  %v1237_v2 = vmul.f32 %v3002_v16, %v3515_v33  ;;  %1130 = vst [vmem:[#allocation1 + $0x23] ss:$4 sm:$0xff] %v3523_v28 }
 0x15d   : > { %vm945_vm4 = vmand %vm883_vm1, %vm921_vm5  ;;  %v3739_v10 = vsel %vm910_vm2, %v3623_v23, 0.0  ;;  %v1294_v0 = vrot.slane %v1235_v46, 1  ;;  %v1357_v31 = vmul.f32 %v3016_v42, %v3512_v59  ;;  %v4192_v45 = vrot.slane %v3483_v63, 2 }
 0x15e   : > { %v2025_v44 = vadd.f32 %v3253_v48, %v2005_v11  ;;  %v2026_v22 = vadd.f32 %v3253_v48, %v2006_v21  ;;  %v3750_v19 = vsel %vm945_vm4, %v3675_v5, 0.0  ;;  %v1295_v9 = vrot.slane %v1236_v30, 1 }
 0x15f   : > { %1127 = vst [vmem:[#allocation1 + $0x20] ss:$4 sm:$0xff] %v4192_v45  ;;  %v4193_v23 = vrot.slane %v3483_v63, 4  ;;  %v1297_v60 = vrot.slane %v1237_v2, 1  ;;  %v1358_v52 = vmul.f32 %v3016_v42, %v3496_v51  ;;  %v1359_v59 = vmul.f32 %v3016_v42, %v3515_v33 }
 0x160   : > { %v1416_v27 = vrot.slane %v1357_v31, 2  ;;  %v4194_v62 = vrot.slane %v3483_v63, 6  ;;  %v2041_v1 = vmax.f32 %v2025_v44, 0.0  ;;  %v2042_v48 = vmax.f32 %v2026_v22, 0.0 }
 0x161   : > { %1128 = vst [vmem:[#allocation1 + $0x21] ss:$4 sm:$0xff] %v4193_v23  ;;  %v1296_v5 = vsel %vm1268_vm10, %v1294_v0, %v1295_v9  ;;  %v1474_v34 = vmul.f32 %v3060_v25, %v3649_v17  ;;  %v1298_v39 = vsel %vm1268_vm10, %v1295_v9, %v1297_v60  ;;  %v1417_v51 = vrot.slane %v1358_v52, 2  ;;  %v3773_v0 = vld.sshfl [vmem:[#allocation1] sm:$0xff pattern:$0x73625140] }
 0x162   : > { %1129 = vst [vmem:[#allocation1 + $0x22] ss:$4 sm:$0xff] %v4194_v62  ;;  %v1335_v7 = vadd.f32 %v1296_v5, %v1213_v49  ;;  %v1419_v20 = vrot.slane %v1359_v59, 2  ;;  %v2057_v43 = vmin.f32 %v2041_v1, 6.0  ;;  %v2058_v33 = vmin.f32 %v2042_v48, 6.0 }
 0x163   : > { %v1336_v46 = vadd.f32 %v1298_v39, %v1214_v40  ;;  %v1475_v63 = vmul.f32 %v3060_v25, %v3640_v24  ;;  %v1418_v11 = vsel %vm1390_vm12, %v1416_v27, %v1417_v51  ;;  %v1512_v30 = vmul.f32 %v3044_v6, %v3649_v17  ;;  %1135 = vst [vmem:[#allocation1 + $0x3] ss:$4 sm:$0xff] %v3621_v8 }
 0x164   : > { %v1420_v21 = vsel %vm1390_vm12, %v1417_v51, %v1419_v20  ;;  %v1513_v2 = vmul.f32 %v3044_v6, %v3640_v24  ;;  %v2069_v49 = vpack.c.bf16 %v2058_v33, %v2057_v43  ;;  %v1457_v31 = vadd.f32 %v1418_v11, %v1335_v7 }
 0x165   : > { %v1458_v45 = vadd.f32 %v1420_v21, %v1336_v46  ;;  %v1514_v40 = vmul.f32 %v3044_v6, %v3654_v37  ;;  %v4195_v44 = vrot.slane %v3523_v28, 2  ;;  %v1570_v22 = vrot.slane %v1512_v30, 1 }
 0x166   : > { %v1571_v9 = vrot.slane %v1513_v2, 1  ;;  %v1633_v23 = vmul.f32 %v3053_v12, %v3649_v17  ;;  %v1634_v60 = vmul.f32 %v3053_v12, %v3640_v24  ;;  %v4196_v52 = vrot.slane %v3523_v28, 4  ;;  %2169 = vmatmul.bf16.gmra.mxu1 %v2069_v49 }
 0x167   : > { %1132 = vst [vmem:[#allocation1] ss:$4 sm:$0xff] %v4195_v44  ;;  %v1490_v59 = vadd.f32 %v1474_v34, %v1457_v31  ;;  %v1491_v27 = vadd.f32 %v1475_v63, %v1458_v45  ;;  %v1573_v62 = vrot.slane %v1514_v40, 1  ;;  %v1635_v1 = vmul.f32 %v3053_v12, %v3654_v37 }
 0x168   : > { %1133 = vst [vmem:[#allocation1 + $0x1] ss:$4 sm:$0xff] %v4196_v52  ;;  %v4197_v48 = vrot.slane %v3523_v28, 6  ;;  %v1572_v5 = vsel %vm1268_vm10, %v1570_v22, %v1571_v9  ;;  %v1691_v39 = vrot.slane %v1633_v23, 2  ;;  %v1692_v7 = vrot.slane %v1634_v60, 2 }
 0x169   : > { %v1749_v51 = vmul.f32 %v3076_v56, %v3739_v10  ;;  %v1574_v20 = vsel %vm1268_vm10, %v1571_v9, %v1573_v62  ;;  %v1611_v34 = vadd.f32 %v1572_v5, %v1490_v59  ;;  %v1694_v43 = vrot.slane %v1635_v1, 2 }
 0x16a   : > { %1134 = vst [vmem:[#allocation1 + $0x2] ss:$4 sm:$0xff] %v4197_v48  ;;  %v1750_v33 = vmul.f32 %v3076_v56, %v3731_v15  ;;  %v1612_v46 = vadd.f32 %v1574_v20, %v1491_v27  ;;  %v1693_v28 = vsel %vm1390_vm12, %v1691_v39, %v1692_v7  ;;  %v1787_v63 = vmul.f32 %v3085_v3, %v3739_v10 }
 0x16b   : > { %v1788_v11 = vmul.f32 %v3085_v3, %v3731_v15  ;;  %v1695_v21 = vsel %vm1390_vm12, %v1692_v7, %v1694_v43  ;;  %v1732_v30 = vadd.f32 %v1693_v28, %v1611_v34  ;;  %v1789_v2 = vmul.f32 %v3085_v3, %v3750_v19 }
 0x16c   : > { %v1908_v49 = vmul.f32 %v3087_v4, %v3739_v10  ;;  %v1733_v31 = vadd.f32 %v1695_v21, %v1612_v46  ;;  %v1845_v45 = vrot.slane %v1787_v63, 1  ;;  %v1909_v44 = vmul.f32 %v3087_v4, %v3731_v15  ;;  %v3821_v46 = vld.sshfl [vmem:[#allocation1 + $0x20] sm:$0xff pattern:$0x73625140] }
 0x16d   : > { %v1846_v40 = vrot.slane %v1788_v11, 1  ;;  %v1765_v22 = vadd.f32 %v1749_v51, %v1732_v30  ;;  %v1848_v9 = vrot.slane %v1789_v2, 1  ;;  %v1910_v23 = vmul.f32 %v3087_v4, %v3750_v19  ;;  %1136 = vst [vmem:[#allocation1 + $0x20] ss:$4 sm:$0xff] %v841_v36  ;;  %v3837_v30 = vld [vmem:[%s4105_s4] ss:$0 sm:$0xff] }
 0x16e   : > { %v1966_v60 = vrot.slane %v1908_v49, 2  ;;  %v1766_v52 = vadd.f32 %v1750_v33, %v1733_v31  ;;  %v1967_v27 = vrot.slane %v1909_v44, 2  ;;  %v850_v62 = vadd.s32 8, %v2974_v54 }
 0x16f   : > { %v1847_v59 = vsel %vm1268_vm10, %v1845_v45, %v1846_v40  ;;  %v1849_v1 = vsel %vm1268_vm10, %v1846_v40, %v1848_v9  ;;  %v1969_v5 = vrot.slane %v1910_v23, 2  ;;  %v1215_v39 = vmul.f32 %v3031_v55, %v3649_v17 }
 0x170   : > { %v1886_v48 = vadd.f32 %v1847_v59, %v1765_v22  ;;  %v1887_v7 = vadd.f32 %v1849_v1, %v1766_v52  ;;  %v1968_v51 = vsel %vm1390_vm12, %v1966_v60, %v1967_v27  ;;  %vm864_vm6 = vcmp.ge.s32.totalorder %v850_v62, 1 }
 0x171   : > { %vm874_vm7 = vcmp.le.s32.totalorder %v850_v62, 16  ;;  %v1970_v20 = vsel %vm1390_vm12, %v1967_v27, %v1969_v5  ;;  %v1216_v43 = vmul.f32 %v3031_v55, %v3640_v24  ;;  %v1238_v33 = vmul.f32 %v3002_v16, %v3649_v17 }
 0x172   : > { %v2007_v34 = vadd.f32 %v1968_v51, %v1886_v48  ;;  %vm884_vm8 = vmand %vm864_vm6, %vm874_vm7  ;;  %v2008_v28 = vadd.f32 %v1970_v20, %v1887_v7  ;;  %v1239_v11 = vmul.f32 %v3002_v16, %v3640_v24  ;;  %v1240_v21 = vmul.f32 %v3002_v16, %v3654_v37 }
 0x173   : > { %vm913_vm9 = vmand %vm884_vm8, %vm886_vm3  ;;  %v3826_v63 = vsel %vm884_vm8, %v3726_v35, 0.0  ;;  %v1299_v49 = vrot.slane %v1238_v33, 1  ;;  %v1360_v31 = vmul.f32 %v3016_v42, %v3649_v17  ;;  %v1361_v22 = vmul.f32 %v3016_v42, %v3640_v24 }
 0x174   : > { %v2027_v2 = vadd.f32 %v3837_v30, %v2007_v34  ;;  %vm948_vm11 = vmand %vm884_vm8, %vm921_vm5  ;;  %v3843_v35 = vsel %vm913_vm9, %v3724_v14, 0.0  ;;  %v2028_v8 = vadd.f32 %v3837_v30, %v2008_v28  ;;  %v1300_v45 = vrot.slane %v1239_v11, 1 }
 0x175   : > { %v3849_v36 = vsel %vm948_vm11, %v3773_v0, 0.0  ;;  %v1302_v40 = vrot.slane %v1240_v21, 1  ;;  %v1362_v9 = vmul.f32 %v3016_v42, %v3654_v37  ;;  %v1421_v14 = vrot.slane %v1360_v31, 2 }
 0x176   : > { %v2043_v44 = vmax.f32 %v2027_v2, 0.0  ;;  %v2044_v23 = vmax.f32 %v2028_v8, 0.0  ;;  %v1301_v60 = vsel %vm1268_vm10, %v1299_v49, %v1300_v45  ;;  %v1476_v52 = vmul.f32 %v3060_v25, %v3739_v10 }
 0x177   : > { %v1303_v17 = vsel %vm1268_vm10, %v1300_v45, %v1302_v40  ;;  %v1337_v59 = vadd.f32 %v1301_v60, %v1215_v39  ;;  %v1422_v62 = vrot.slane %v1361_v22, 2  ;;  %v1424_v48 = vrot.slane %v1362_v9, 2 }
 0x178   : > { %v2059_v0 = vmin.f32 %v2043_v44, 6.0  ;;  %v1338_v27 = vadd.f32 %v1303_v17, %v1216_v43  ;;  %v2060_v1 = vmin.f32 %v2044_v23, 6.0  ;;  %v1477_v24 = vmul.f32 %v3060_v25, %v3731_v15 }
 0x179   : > { %v1515_v37 = vmul.f32 %v3044_v6, %v3739_v10  ;;  %v1423_v5 = vsel %vm1390_vm12, %v1421_v14, %v1422_v62  ;;  %v1516_v7 = vmul.f32 %v3044_v6, %v3731_v15  ;;  %v1517_v51 = vmul.f32 %v3044_v6, %v3750_v19 }
 0x17a   : > { %v1636_v39 = vmul.f32 %v3053_v12, %v3739_v10  ;;  %v2070_v20 = vpack.c.bf16 %v2060_v1, %v2059_v0  ;;  %v1425_v34 = vsel %vm1390_vm12, %v1422_v62, %v1424_v48  ;;  %v1459_v43 = vadd.f32 %v1423_v5, %v1337_v59 }
 0x17b   : > { %v1575_v33 = vrot.slane %v1515_v37, 1  ;;  %v1460_v28 = vadd.f32 %v1425_v34, %v1338_v27  ;;  %v1576_v11 = vrot.slane %v1516_v7, 1  ;;  %v1578_v21 = vrot.slane %v1517_v51, 1 }
 0x17c   : > { %v1637_v2 = vmul.f32 %v3053_v12, %v3731_v15  ;;  %2174 = vmatmul.bf16.vlgmr.msrb.gmra.mxu3 %v2070_v20  ;;  %v1492_v49 = vadd.f32 %v1476_v52, %v1459_v43  ;;  %v1638_v31 = vmul.f32 %v3053_v12, %v3750_v19  ;;  %v1696_v8 = vrot.slane %v1636_v39, 2 }
 0x17d   : > { %v1751_v45 = vmul.f32 %v3076_v56, %v3843_v35  ;;  %v1493_v40 = vadd.f32 %v1477_v24, %v1460_v28  ;;  %v1577_v44 = vsel %vm1268_vm10, %v1575_v33, %v1576_v11  ;;  %v1579_v22 = vsel %vm1268_vm10, %v1576_v11, %v1578_v21 }
 0x17e   : > { %v1697_v9 = vrot.slane %v1637_v2, 2  ;;  %v1613_v14 = vadd.f32 %v1577_v44, %v1492_v49  ;;  %v1699_v23 = vrot.slane %v1638_v31, 2  ;;  %v1752_v60 = vmul.f32 %v3076_v56, %v3826_v63  ;;  %v1137_v2 = vld.sshfl [vmem:[#allocation1] sm:$0xff pattern:$0x73625140] }
 0x17f   : > { %v1790_v17 = vmul.f32 %v3085_v3, %v3843_v35  ;;  %v1614_v52 = vadd.f32 %v1579_v22, %v1493_v40  ;;  %v1791_v59 = vmul.f32 %v3085_v3, %v3826_v63  ;;  %v1792_v27 = vmul.f32 %v3085_v3, %v3849_v36  ;;  %v1138_v40 = vld.sshfl [vmem:[#allocation1 + $0x20] sm:$0xff pattern:$0x73625140] }
 0x180   : > { %v1698_v0 = vsel %vm1390_vm12, %v1696_v8, %v1697_v9  ;;  %v1700_v62 = vsel %vm1390_vm12, %v1697_v9, %v1699_v23  ;;  %v1911_v24 = vmul.f32 %v3087_v4, %v3843_v35  ;;  %v1912_v51 = vmul.f32 %v3087_v4, %v3826_v63 }
 0x181   : > { %v1734_v1 = vadd.f32 %v1698_v0, %v1613_v14  ;;  %v1850_v48 = vrot.slane %v1790_v17, 1  ;;  %v1735_v37 = vadd.f32 %v1700_v62, %v1614_v52  ;;  %v1851_v5 = vrot.slane %v1791_v59, 1 }
 0x182   : > { %v1853_v7 = vrot.slane %v1792_v27, 1  ;;  %v1913_v20 = vmul.f32 %v3087_v4, %v3849_v36  ;;  %v1971_v34 = vrot.slane %v1911_v24, 2  ;;  %v851_v43 = vadd.s32 9, %v2974_v54 }
 0x183   : > { %v1767_v39 = vadd.f32 %v1751_v45, %v1734_v1  ;;  %v1768_v33 = vadd.f32 %v1752_v60, %v1735_v37  ;;  %v1852_v28 = vsel %vm1268_vm10, %v1850_v48, %v1851_v5  ;;  %v1972_v21 = vrot.slane %v1912_v51, 2 }
 0x184   : > { %v1854_v11 = vsel %vm1268_vm10, %v1851_v5, %v1853_v7  ;;  %v1974_v31 = vrot.slane %v1913_v20, 2  ;;  %vm865_vm13 = vcmp.ge.s32.totalorder %v851_v43, 1  ;;  %vm875_vm14 = vcmp.le.s32.totalorder %v851_v43, 16 }
 0x185   : > { %v1888_v49 = vadd.f32 %v1852_v28, %v1767_v39  ;;  %v1889_v8 = vadd.f32 %v1854_v11, %v1768_v33  ;;  %v1973_v45 = vsel %vm1390_vm12, %v1971_v34, %v1972_v21  ;;  %vm885_vm15 = vmand %vm865_vm13, %vm875_vm14  ;;  %v1217_v44 = vmul.f32 %v3031_v55, %v3739_v10 }
 0x186   : > { %v1218_v54 = vmul.f32 %v3031_v55, %v3731_v15  ;;  %v1975_v22 = vsel %vm1390_vm12, %v1972_v21, %v1974_v31  ;;  %vm916_vm0 = vmand %vm885_vm15, %vm886_vm3  ;;  %v3906_v14 = vsel %vm885_vm15, %v1137_v2, 0.0  ;;  %v1241_v23 = vmul.f32 %v3002_v16, %v3739_v10  ;;  %v3922_v62 = vpop.f32.mrf.mxu1 }
 0x187   : > { %v2009_v9 = vadd.f32 %v1973_v45, %v1888_v49  ;;  %v2010_v60 = vadd.f32 %v1975_v22, %v1889_v8  ;;  %vm951_vm1 = vmand %vm885_vm15, %vm921_vm5  ;;  %v1196_v17 = vsel %vm916_vm0, %v3821_v46, 0.0  ;;  %v1242_v55 = vmul.f32 %v3002_v16, %v3731_v15 }
 0x188   : > { %v1243_v52 = vmul.f32 %v3002_v16, %v3750_v19  ;;  %v3918_v0 = vsel %vm951_vm1, %v1138_v40, 0.0  ;;  %v1304_v59 = vrot.slane %v1241_v23, 1  ;;  %v1363_v27 = vmul.f32 %v3016_v42, %v3739_v10 }
 0x189   : > { %v2029_v57 = vadd.f32 %v3837_v30, %v2009_v9  ;;  %v2030_v61 = vadd.f32 %v3837_v30, %v2010_v60  ;;  %v1305_v1 = vrot.slane %v1242_v55, 1  ;;  %v1364_v48 = vmul.f32 %v3016_v42, %v3731_v15 }
 0x18a   : > { %v1307_v46 = vrot.slane %v1243_v52, 1  ;;  %v1365_v16 = vmul.f32 %v3016_v42, %v3750_v19  ;;  %v1426_v37 = vrot.slane %v1363_v27, 2  ;;  %v1478_v5 = vmul.f32 %v3060_v25, %v3843_v35 }
 0x18b   : > { %v2045_v24 = vmax.f32 %v2029_v57, 0.0  ;;  %v2046_v7 = vmax.f32 %v2030_v61, 0.0  ;;  %v1306_v10 = vsel %vm1268_vm10, %v1304_v59, %v1305_v1  ;;  %v1427_v39 = vrot.slane %v1364_v48, 2 }
 0x18c   : > { %v1308_v51 = vsel %vm1268_vm10, %v1305_v1, %v1307_v46  ;;  %v1339_v34 = vadd.f32 %v1306_v10, %v1217_v44  ;;  %v1429_v33 = vrot.slane %v1365_v16, 2  ;;  %v1479_v42 = vmul.f32 %v3060_v25, %v3826_v63 }
 0x18d   : > { %v2061_v20 = vmin.f32 %v2045_v24, 6.0  ;;  %v1340_v43 = vadd.f32 %v1308_v51, %v1218_v54  ;;  %v2062_v28 = vmin.f32 %v2046_v7, 6.0  ;;  %v1428_v15 = vsel %vm1390_vm12, %v1426_v37, %v1427_v39 }
 0x18e   : > { %v1518_v19 = vmul.f32 %v3044_v6, %v3843_v35  ;;  %v1430_v11 = vsel %vm1390_vm12, %v1427_v39, %v1429_v33  ;;  %v1461_v21 = vadd.f32 %v1428_v15, %v1339_v34  ;;  %v1519_v2 = vmul.f32 %v3044_v6, %v3826_v63  ;;  %v2152_v55 = vpop.f32.mrf.mxu1 }
 0x18f   : > { %v1520_v49 = vmul.f32 %v3044_v6, %v3849_v36  ;;  %v2071_v31 = vpack.c.bf16 %v2062_v28, %v2061_v20  ;;  %v1462_v8 = vadd.f32 %v1430_v11, %v1340_v43  ;;  %v1639_v40 = vmul.f32 %v3053_v12, %v3843_v35 }
 0x190   : > { %v1580_v45 = vrot.slane %v1518_v19, 1  ;;  %v1494_v44 = vadd.f32 %v1478_v5, %v1461_v21  ;;  %v1581_v25 = vrot.slane %v1519_v2, 1  ;;  %v1640_v22 = vmul.f32 %v3053_v12, %v3826_v63 }
 0x191   : > { %v1583_v54 = vrot.slane %v1520_v49, 1  ;;  %2179 = vmatmul.bf16.gmra.mxu3 %v2071_v31  ;;  %v1495_v9 = vadd.f32 %v1479_v42, %v1462_v8  ;;  %v1641_v23 = vmul.f32 %v3053_v12, %v3849_v36  ;;  %v1701_v60 = vrot.slane %v1639_v40, 2  ;;  %v3958_v12 = vld [vmem:[%s4107_s6] ss:$0 sm:$0xff] }
 0x192   : > { %v1753_v6 = vmul.f32 %v3076_v56, %v1196_v17  ;;  %v1582_v52 = vsel %vm1268_vm10, %v1580_v45, %v1581_v25  ;;  %v1702_v35 = vrot.slane %v1640_v22, 2  ;;  %v1754_v59 = vmul.f32 %v3076_v56, %v3906_v14 }
 0x193   : > { %v1584_v57 = vsel %vm1268_vm10, %v1581_v25, %v1583_v54  ;;  %v1615_v27 = vadd.f32 %v1582_v52, %v1494_v44  ;;  %v1704_v61 = vrot.slane %v1641_v23, 2  ;;  %v1793_v1 = vmul.f32 %v3085_v3, %v1196_v17 }
 0x194   : > { %v1616_v63 = vadd.f32 %v1584_v57, %v1495_v9  ;;  %v1703_v36 = vsel %vm1390_vm12, %v1701_v60, %v1702_v35  ;;  %v1794_v46 = vmul.f32 %v3085_v3, %v3906_v14  ;;  %v1795_v48 = vmul.f32 %v3085_v3, %v3918_v0 }
 0x195   : > { %v1914_v56 = vmul.f32 %v3087_v4, %v1196_v17  ;;  %v1705_v24 = vsel %vm1390_vm12, %v1702_v35, %v1704_v61  ;;  %v1736_v16 = vadd.f32 %v1703_v36, %v1615_v27  ;;  %v1855_v37 = vrot.slane %v1793_v1, 1 }
 0x196   : > { %v1915_v5 = vmul.f32 %v3087_v4, %v3906_v14  ;;  %v1737_v7 = vadd.f32 %v1705_v24, %v1616_v63  ;;  %v1856_v10 = vrot.slane %v1794_v46, 1  ;;  %v1858_v51 = vrot.slane %v1795_v48, 1 }
 0x197   : > { %v1916_v39 = vmul.f32 %v3087_v4, %v3918_v0  ;;  %v1769_v20 = vadd.f32 %v1753_v6, %v1736_v16  ;;  %v1976_v34 = vrot.slane %v1914_v56, 2  ;;  %v2151_v17 = vadd.f32 %v3958_v12, %v3922_v62 }
 0x198   : > { %v1977_v3 = vrot.slane %v1915_v5, 2  ;;  %v1770_v43 = vadd.f32 %v1754_v59, %v1737_v7  ;;  %v1857_v33 = vsel %vm1268_vm10, %v1855_v37, %v1856_v10  ;;  %v1859_v28 = vsel %vm1268_vm10, %v1856_v10, %v1858_v51  ;;  %v4198_v7 = vld [vmem:[#allocation7_spill] sm:$0xff] }
 0x199   : > { %v1979_v15 = vrot.slane %v1916_v39, 2  ;;  %v1890_v14 = vadd.f32 %v1857_v33, %v1769_v20  ;;  %v2190_v19 = vrot.slane %v2810_v13, 1  ;;  %v2191_v4 = vrot.slane %v2818_v18, 1  ;;  %v2155_v31 = vpop.f32.mrf.mxu1 }
 0x19a   : > { %v1978_v42 = vsel %vm1390_vm12, %v1976_v34, %v1977_v3  ;;  %v1891_v0 = vadd.f32 %v1859_v28, %v1770_v43  ;;  %v2153_v62 = vadd.f32 %v3958_v12, %v2152_v55  ;;  %v2193_v21 = vrot.slane %v2837_v29, 1 }
 0x19b   : > { %v1980_v11 = vsel %vm1390_vm12, %v1977_v3, %v1979_v15  ;;  %v2011_v2 = vadd.f32 %v1978_v42, %v1890_v14  ;;  %v2192_v49 = vsel %vm1268_vm10, %v2190_v19, %v2191_v4  ;;  %v2195_v8 = vrot.slane %v2833_v26, 1  ;;  %v4200_v3 = vld [vmem:[#allocation8_spill] sm:$0xff]  ;;  %v4201_v14 = vld [vmem:[#allocation10_spill] sm:$0xff] }
 0x19c   : > { %v2196_v45 = vrot.slane %v2841_v32, 1  ;;  %v2012_v40 = vadd.f32 %v1980_v11, %v1891_v0  ;;  %v2246_v44 = vadd.f32 %v2192_v49, %v2151_v17  ;;  %v2194_v13 = vsel %vm1268_vm10, %v2191_v4, %v2193_v21 }
 0x19d   : > { %v2156_v18 = vadd.f32 %v3958_v12, %v2155_v31  ;;  %v2031_v25 = vadd.f32 %v3837_v30, %v2011_v2  ;;  %v2247_v54 = vadd.f32 %v2194_v13, %v2153_v62  ;;  %v2198_v9 = vrot.slane %v2855_v41, 1  ;;  %v4202_v62 = vld [vmem:[#allocation9_spill] sm:$0xff]  ;;  %v4203_v2 = vld [vmem:[#allocation11_spill] sm:$0xff] }
 0x19e   : > { %v2197_v22 = vsel %vm1268_vm10, %v2195_v8, %v2196_v45  ;;  %v2032_v29 = vadd.f32 %v3837_v30, %v2012_v40  ;;  %2262 = vst [vmem:[%s3992_s12] sm:$0xff] %v2246_v44  ;;  %v2200_v59 = vrot.slane %v2851_v38, 1  ;;  %v2201_v27 = vrot.slane %v2863_v47, 1  ;;  %v4204_v44 = vld [vmem:[#allocation12_spill] sm:$0xff] }
 0x19f   : > { %v2248_v26 = vadd.f32 %v2197_v22, %v2156_v18  ;;  %v2047_v32 = vmax.f32 %v2031_v25, 0.0  ;;  %2263 = vst [vmem:[%s3992_s12 + $0x8] sm:$0xff] %v2247_v54  ;;  %v2199_v30 = vsel %vm1268_vm10, %v2196_v45, %v2198_v9  ;;  %v2203_v36 = vrot.slane %v2873_v53, 1 }
 0x1a0   : > { %v2048_v23 = vmax.f32 %v2032_v29, 0.0  ;;  %v2202_v63 = vsel %vm1268_vm10, %v2200_v59, %v2201_v27  ;;  %v2205_v38 = vrot.slane %v2869_v50, 1  ;;  %v2206_v47 = vrot.slane %v2881_v58, 1  ;;  %v4199_v50 = vld [vmem:[#allocation6_spill] sm:$0xff]  ;;  %v4205_v29 = vld [vmem:[#allocation13_spill] sm:$0xff] }
 0x1a1   : > { %2264 = vst [vmem:[%s3992_s12 + $0x10] sm:$0xff] %v2248_v26  ;;  %v2063_v60 = vmin.f32 %v2047_v32, 6.0  ;;  %v2157_v55 = vpop.f32.mrf.mxu1  ;;  %v2204_v48 = vsel %vm1268_vm10, %v2201_v27, %v2203_v36  ;;  %v2208_v10 = vrot.slane %v4198_v7, 1  ;;  %v2210_v58 = vrot.slane %v4199_v50, 1  ;;  %v4206_v32 = vld [vmem:[#allocation14_spill] sm:$0xff] }
 0x1a2   : > { %v2064_v6 = vmin.f32 %v2048_v23, 6.0  ;;  %v2158_v57 = vadd.f32 %v3958_v12, %v2157_v55  ;;  %v2207_v37 = vsel %vm1268_vm10, %v2205_v38, %v2206_v47  ;;  %v2211_v17 = vrot.slane %v4200_v3, 1 }
 0x1a3   : > { %v2209_v39 = vsel %vm1268_vm10, %v2206_v47, %v2208_v10  ;;  %v2213_v42 = vrot.slane %v4201_v14, 1  ;;  %v2215_v21 = vrot.slane %v4202_v62, 1  ;;  %v2216_v49 = vrot.slane %v4203_v2, 1 }
 0x1a4   : > { %v2072_v52 = vpack.c.bf16 %v2064_v6, %v2063_v60  ;;  %v2249_v35 = vadd.f32 %v2199_v30, %v2158_v57  ;;  %v2212_v33 = vsel %vm1268_vm10, %v2210_v58, %v2211_v17  ;;  %v2218_v13 = vrot.slane %v4204_v44, 1  ;;  %v4207_v30 = vld [vmem:[#allocation15_spill] sm:$0xff] }
 0x1a5   : > { %v2214_v4 = vsel %vm1268_vm10, %v2211_v17, %v2213_v42  ;;  %v2217_v8 = vsel %vm1268_vm10, %v2215_v21, %v2216_v49  ;;  %v2220_v26 = vrot.slane %v4205_v29, 1  ;;  %v2221_v9 = vrot.slane %v4206_v32, 1 }
 0x1a6   : > { %2184 = vmatmul.bf16.gmra.mxu3 %v2072_v52  ;;  %2265 = vst [vmem:[%s3992_s12 + $0x18] sm:$0xff] %v2249_v35  ;;  %v2219_v25 = vsel %vm1268_vm10, %v2216_v49, %v2218_v13  ;;  %v2223_v52 = vrot.slane %v4207_v30, 1 }
 0x1a7   : > { %v2222_v60 = vsel %vm1268_vm10, %v2220_v26, %v2221_v9 }
 0x1a8   : > { %v2224_v35 = vsel %vm1268_vm10, %v2221_v9, %v2223_v52 }
 0x1b0   : > { %v2160_v41 = vpop.f32.mrf.mxu1 }
 0x1b1   : > { %v2161_v61 = vadd.f32 %v3958_v12, %v2160_v41  ;;  %v4208_v41 = vld [vmem:[#allocation16_spill] sm:$0xff] }
 0x1b3   : > { %v2250_v1 = vadd.f32 %v2202_v63, %v2161_v61  ;;  %v2225_v63 = vrot.slane %v4208_v41, 1  ;;  %v4209_v61 = vld [vmem:[#allocation17_spill] sm:$0xff] }
 0x1b5   : > { %2266 = vst [vmem:[%s3992_s12 + $0x20] sm:$0xff] %v2250_v1  ;;  %v2226_v1 = vrot.slane %v4209_v61, 1 }
 0x1b8   : > { %v2162_v46 = vpop.f32.mrf.mxu1 }
 0x1b9   : > { %v2163_v56 = vadd.f32 %v3958_v12, %v2162_v46  ;;  %v2227_v46 = vsel %vm1268_vm10, %v2225_v63, %v2226_v1 }
 0x1bb   : > { %v2251_v24 = vadd.f32 %v2204_v48, %v2163_v56 }
 0x1bd   : > { %2267 = vst [vmem:[%s3992_s12 + $0x28] sm:$0xff] %v2251_v24  ;;  %v4210_v24 = vld [vmem:[#allocation18_spill] sm:$0xff] }
 0x1be   : > { %v2228_v38 = vrot.slane %v4210_v24, 1 }
 0x1cd   : > { %v2165_v16 = vpop.f32.mrf.mxu1 }
 0x1ce   : > { %v2166_v5 = vadd.f32 %v3958_v12, %v2165_v16  ;;  %v2229_v16 = vsel %vm1268_vm10, %v2226_v1, %v2228_v38 }
 0x1d0   : > { %v2252_v53 = vadd.f32 %v2207_v37, %v2166_v5 }
 0x1d2   : > { %2268 = vst [vmem:[%s3992_s12 + $0x30] sm:$0xff] %v2252_v53 }
 0x1d5   : > { %v2167_v51 = vpop.f32.mrf.mxu1 }
 0x1d6   : > { %v2168_v20 = vadd.f32 %v3958_v12, %v2167_v51 }
 0x1d8   : > { %v2253_v34 = vadd.f32 %v2209_v39, %v2168_v20 }
 0x1da   : > { %2269 = vst [vmem:[%s3992_s12 + $0x38] sm:$0xff] %v2253_v34 }
 0x1e3   : > { %v2170_v43 = vpop.f32.mrf.mxu1 }
 0x1e4   : > { %v2171_v28 = vadd.f32 %v3958_v12, %v2170_v43 }
 0x1e6   : > { %v2254_v15 = vadd.f32 %v2212_v33, %v2171_v28 }
 0x1e8   : > { %2270 = vst [vmem:[%s3992_s12 + $0x40] sm:$0xff] %v2254_v15 }
 0x1eb   : > { %v2172_v19 = vpop.f32.mrf.mxu1 }
 0x1ec   : > { %v2173_v0 = vadd.f32 %v3958_v12, %v2172_v19 }
 0x1ee   : > { %v2255_v11 = vadd.f32 %v2214_v4, %v2173_v0 }
 0x1f0   : > { %2271 = vst [vmem:[%s3992_s12 + $0x48] sm:$0xff] %v2255_v11 }
 0x1ff   : > { %v2175_v31 = vpop.f32.mrf.mxu3 }
 0x200   : > { %v2176_v45 = vadd.f32 %v3958_v12, %v2175_v31 }
 0x202   : > { %v2256_v40 = vadd.f32 %v2217_v8, %v2176_v45 }
 0x204   : > { %2272 = vst [vmem:[%s3992_s12 + $0x50] sm:$0xff] %v2256_v40 }
 0x207   : > { %v2177_v18 = vpop.f32.mrf.mxu3 }
 0x208   : > { %v2178_v54 = vadd.f32 %v3958_v12, %v2177_v18 }
 0x20a   : > { %v2257_v22 = vadd.f32 %v2219_v25, %v2178_v54 }
 0x20c   : > { %2273 = vst [vmem:[%s3992_s12 + $0x58] sm:$0xff] %v2257_v22 }
 0x214   : > { %v2180_v23 = vpop.f32.mrf.mxu3 }
 0x215   : > { %v2181_v6 = vadd.f32 %v3958_v12, %v2180_v23 }
 0x217   : > { %v2258_v55 = vadd.f32 %v2222_v60, %v2181_v6 }
 0x219   : > { %2274 = vst [vmem:[%s3992_s12 + $0x60] sm:$0xff] %v2258_v55 }
 0x21c   : > { %v2182_v57 = vpop.f32.mrf.mxu3 }
 0x21d   : > { %v2183_v59 = vadd.f32 %v3958_v12, %v2182_v57 }
 0x21f   : > { %v2259_v27 = vadd.f32 %v2224_v35, %v2183_v59 }
 0x221   : > { %2275 = vst [vmem:[%s3992_s12 + $0x68] sm:$0xff] %v2259_v27 }
 0x229   : > { %v2185_v36 = vpop.f32.mrf.mxu3 }
 0x22a   : > { %v2186_v48 = vadd.f32 %v3958_v12, %v2185_v36 }
 0x22c   : > { %v2260_v56 = vadd.f32 %v2227_v46, %v2186_v48 }
 0x22e   : > { %2276 = vst [vmem:[%s3992_s12 + $0x70] sm:$0xff] %v2260_v56 }
 0x231   : > { %v2187_v47 = vpop.f32.mrf.mxu3 }
 0x232   : > { %v2188_v37 = vadd.f32 %v3958_v12, %v2187_v47 }
 0x234   : > { %v2261_v5 = vadd.f32 %v2229_v16, %v2188_v37 }
 0x236   : > { %2277 = vst [vmem:[%s3992_s12 + $0x78] sm:$0xff] %v2261_v5 }
 0x237   : > { %2602 = shalt.err (!%p2599_p6)
}
 0x238   : > { %s2671_s22 = smov 128   ;;  %s2672_s12 = smov 8  }
 0x239   : > { %2497 = dma.vmem_to_hbm [thread:$0]  (%p2764_p3), %s2295_s27, 2048, %s2297_s28, %s2279_s21, %s2671_s22, %s2671_s22, %s2672_s12  }
 0x23a PF: > { %p2503_p7 = scmp.ge.s32.totalorder %s2669_s8, 2  ;;  %s2311_s20 = sand.u32 1, %s2641_s24  }
 0x23b   : > { %s2312_s10 = scalar_lea.sflag [#allocation3], %s2311_s20 }
 0x23c   : > { %p2500_p9 = pnand %p2503_p7, %p2773_p8 }
 0x23e   : > { %p2501_p10 = pneg %p2500_p9 }
 0x240   : > { %2636 = dma.done.wait (%p2501_p10), %s2312_s10, 2048  }
 0x241   : > { %2638 = vsyncadd (%p2501_p10), %s2312_s10, 4294965248  ;;  %s20_s8 = sadd.s32 1, %s2669_s8   ;;  %s4211_s14 = sld [smem:[#allocation5_spill]] }
 0x242   : > { %p17_p11 = scmp.ge.s32.totalorder %s20_s8, 6   ;;  %s4212_s24 = smov %s2645_s25 }
 0x243   : > { %s4213_s25 = smov %s2649_s26  ;;  %s4214_s26 = smov %s2782_s19 }
 0x244   : > { %s4215_s27 = smov %s2661_s29  ;;  %s4216_s28 = smov %s2665_s30 }
 0x245   : > { %s4217_s29 = smov %s4220_s11  ;;  %19 = sbr.rel (!%p17_p11) target bundleno = 5 (0x5), region = 98 }
 0x247   : > { %s4218_s30 = smov %s4211_s14 }
 0x24a   :  { %2318 = vsyncpa [#allocation3], 1 }
 0x24b   :  { %2320 = vsyncpa [#allocation3 + $0x1], 1 }

</bundles_post_ra>
